<compile_context>
chip_gen: v7x
topology: tpu7x:2x2x1
jax: 0.10.0
libtpu: 0.0.40
codegen_flags: <defaults>
</compile_context>

<pallas_src>
import functools
import math

import jax
import jax.numpy as jnp
from jax import lax
from jax.experimental import pallas as pl
from jax.experimental.pallas import tpu as pltpu


def _relu6(x):
    return jnp.clip(x, 0.0, 6.0)


def _matmul_1x1(w, x, matmul_dtype):
    """(M, K) @ (K, N) for a 1x1 conv in (C, lanes) layout.

    Tiny K would run the MXU at <1% utilization, so use VPU broadcast-MACs there;
    otherwise use the MXU with matmul_dtype operands (bf16 by default) and f32 accum.
    """
    _, k = w.shape
    if k <= 8:
        acc = w[:, 0:1] * x[0:1, :]
        for c in range(1, k):
            acc = acc + w[:, c:c + 1] * x[c:c + 1, :]
        return acc
    return jnp.dot(w.astype(matmul_dtype), x.astype(matmul_dtype),
                   preferred_element_type=jnp.float32)


# --------------------------------------------------------------------------------------
# stride == 1 (module default): lane-chunk spatially tiled, lane-dense (C, lanes) layout
# --------------------------------------------------------------------------------------
def _expanded_conv_kernel_s1(xp_ref, xc_ref, xn_ref,
                             w_e_ref, be_ref, w_dw_ref, bd_ref, w_p_ref, bp_ref,
                             out_ref, *, W, L, dil, HW,
                             expand_ratio, skip_connection, matmul_dtype):
    t = pl.program_id(1)
    halo = dil * W + dil               # lanes of context needed on each side
    Lw = L + 2 * halo

    # Haloed input window (Cin, Lw) assembled from prev / current / next lane blocks.
    x_cur = xc_ref[...]
    x_w = jnp.concatenate(
        [xp_ref[...][:, L - halo:], x_cur, xn_ref[...][:, :halo]], axis=-1)
    x_w = x_w.astype(jnp.float32)

    # ---- expand: 1x1 conv (BN scale pre-folded) + bias + ReLU6 ----
    if expand_ratio != 1:
        xe = _relu6(_matmul_1x1(w_e_ref[...], x_w, matmul_dtype) + be_ref[...])
    else:
        xe = x_w

    # Zero window lanes whose flat image index is outside [0, H*W): this implements the
    # depthwise zero-padding of rows AND masks the clamped-garbage halos of edge tiles.
    lane = lax.broadcasted_iota(jnp.int32, (1, Lw), 1)
    gidx = t * L - halo + lane
    xe = xe * jnp.logical_and(gidx >= 0, gidx < HW).astype(jnp.float32)

    # Column-border masks (depend only on the output column; L is a multiple of W so
    # the pattern is tile-independent).  Center column taps need no mask.
    col = lax.broadcasted_iota(jnp.int32, (1, L), 1) % W
    colmask = [(col >= dil).astype(jnp.float32), None,
               (col < W - dil).astype(jnp.float32)]

    # ---- depthwise 3x3: 3 reused row strips + 9 small column slices (no rolls) ----
    w_dw = w_dw_ref[...]               # (Cmid, 9), BN scale pre-folded
    acc = None
    for kh in range(3):
        row = xe[:, kh * dil * W: kh * dil * W + L + 2 * dil]
        for kw in range(3):
            win = row[:, kw * dil: kw * dil + L]
            if colmask[kw] is not None:
                win = win * colmask[kw]
            term = win * w_dw[:, kh * 3 + kw: kh * 3 + kw + 1]
            acc = term if acc is None else acc + term
    yd = _relu6(acc + bd_ref[...])                                    # (Cmid, L)

    # ---- project: 1x1 conv (BN scale pre-folded) + bias ----
    out = _matmul_1x1(w_p_ref[...], yd, matmul_dtype) + bp_ref[...]   # (Cout, L)

    if skip_connection:
        out = out + x_cur.astype(jnp.float32)

    out_ref[...] = out.astype(out_ref.dtype)    # L multiple of 128 -> unmasked vst


def _choose_tile_lanes(H, W, Cin, Cmid, Cout, dil, itemsize, tile_lanes):
    """Largest lane-chunk (multiple of lcm(W,128), dividing H*W) under a VMEM budget."""
    HW = H * W
    halo = dil * W + dil

    def ok(L):
        return 0 < L <= HW and HW % L == 0 and L % W == 0 and L >= halo

    if tile_lanes is not None:
        return tile_lanes if ok(tile_lanes) else HW

    base = (W * 128) // math.gcd(W, 128)          # lcm(W, 128)
    budget = 8 * 1024 * 1024                      # conservative even for v7x (64 MiB VMEM)

    def est_bytes(L):
        Lw = L + 2 * halo
        interm = 4 * Cmid * Lw * 3                            # xe / tap / acc (f32)
        io = itemsize * 2 * (3 * Cin * L + Cout * L)          # double-buffered blocks
        return interm + io

    if est_bytes(HW) <= budget:
        return HW                                  # whole image fits: single tile
    cands = [L for L in range(base, HW, base) if ok(L)]
    fits = [L for L in cands if est_bytes(L) <= budget]
    if fits:
        return max(fits)
    # TODO(synk): for shapes where H*W has no 128-aligned divisor (e.g. 14x14), pad the
    # lane axis instead of falling back to a single (masked-store) tile.
    return min(cands) if cands else HW


def _expanded_conv_stride1(x_nchw, params, *, dilation, expand_ratio,
                           skip_connection, matmul_dtype, tile_lanes):
    N, Cin, H, W = x_nchw.shape
    Cmid = params["w_dw"].shape[0]
    Cout = params["w_proj"].shape[0]
    HW = H * W
    io_dtype = x_nchw.dtype

    # NCHW -> (N, C, H*W): pure reshape, keep the caller's activation dtype for I/O.
    x = x_nchw.reshape(N, Cin, HW)

    # Fold eval-mode BN scales into the conv weights (bias adds stay in-kernel).
    w_e = (params["w_expand"] * params["scale_e"]).astype(jnp.float32)
    b_e = params["bias_e"].astype(jnp.float32)
    w_dw = (params["w_dw"] * params["scale_d"]).astype(jnp.float32)
    b_d = params["bias_d"].astype(jnp.float32)
    w_p = (params["w_proj"] * params["scale_p"]).astype(jnp.float32)
    b_p = params["bias_p"].astype(jnp.float32)

    L = _choose_tile_lanes(H, W, Cin, Cmid, Cout, dilation,
                           jnp.dtype(io_dtype).itemsize, tile_lanes)
    T = HW // L

    kernel = functools.partial(
        _expanded_conv_kernel_s1,
        W=W, L=L, dil=dilation, HW=HW,
        expand_ratio=expand_ratio, skip_connection=skip_connection,
        matmul_dtype=matmul_dtype)

    def full(a):
        return pl.BlockSpec(a.shape, lambda n, t, _nd=a.ndim: (0,) * _nd)

    out = pl.pallas_call(
        kernel,
        out_shape=jax.ShapeDtypeStruct((N, Cout, HW), io_dtype),
        grid_spec=pltpu.PrefetchScalarGridSpec(
            num_scalar_prefetch=0,
            grid=(N, T),
            in_specs=[
                # prev / current / next lane blocks of x (clamped at the image edges;
                # the out-of-image halo lanes are zeroed in-kernel).
                pl.BlockSpec((None, Cin, L),
                             lambda n, t: (n, 0, jnp.maximum(t - 1, 0))),
                pl.BlockSpec((None, Cin, L), lambda n, t: (n, 0, t)),
                pl.BlockSpec((None, Cin, L),
                             lambda n, t: (n, 0, jnp.minimum(t + 1, T - 1))),
                full(w_e), full(b_e), full(w_dw), full(b_d), full(w_p), full(b_p),
            ],
            out_specs=pl.BlockSpec((None, Cout, L), lambda n, t: (n, 0, t)),
        ),
        compiler_params=pltpu.CompilerParams(
            dimension_semantics=("parallel", "parallel"),
            vmem_limit_bytes=32 * 1024 * 1024),
    )(x, x, x, w_e, b_e, w_dw, b_d, w_p, b_p)

    return out.reshape(N, Cout, H, W)


# --------------------------------------------------------------------------------------
# Fallback kernel for stride != 1 (NHWC layout).
# TODO(synk): port to the lane-dense (C, Hout*Wout) layout used by the stride==1 path.
# --------------------------------------------------------------------------------------
def _expanded_conv_kernel_strided(x_ref, w_e_ref, be_ref, w_dw_ref, bd_ref,
                                  w_p_ref, bp_ref, out_ref, pad_ref, *,
                                  H, W, Cin, Cmid, Cout,
                                  stride, dilation, pad, Hout, Wout, expand_ratio):
    Hp, Wp = H + 2 * pad, W + 2 * pad

    # Zero only the padding border strips, and only once (scratch persists across the
    # batch grid axis) instead of a full-buffer zero every step.
    @pl.when(pl.program_id(0) == 0)
    def _():
        pad_ref[0:pad, :, :] = jnp.zeros((pad, Wp, Cmid), jnp.float32)
        pad_ref[pad + H:Hp, :, :] = jnp.zeros((Hp - pad - H, Wp, Cmid), jnp.float32)
        pad_ref[:, 0:pad, :] = jnp.zeros((Hp, pad, Cmid), jnp.float32)
        pad_ref[:, pad + W:Wp, :] = jnp.zeros((Hp, Wp - pad - W, Cmid), jnp.float32)

    x = x_ref[0].astype(jnp.float32)                         # (H, W, Cin)
    if expand_ratio != 1:
        xe = jnp.dot(x.reshape(H * W, Cin), w_e_ref[...],
                     preferred_element_type=jnp.float32)
        xe = _relu6(xe + be_ref[...]).reshape(H, W, Cmid)
    else:
        xe = x
    pad_ref[pl.ds(pad, H), pl.ds(pad, W), :] = xe
    xp = pad_ref[...]
    span_h = (Hout - 1) * stride + 1
    span_w = (Wout - 1) * stride + 1
    w_dw = w_dw_ref[...]                                      # (9, Cmid)
    acc = None
    for kh in range(3):
        for kw in range(3):
            win = xp[kh * dilation: kh * dilation + span_h: stride,
                     kw * dilation: kw * dilation + span_w: stride, :]
            term = win * w_dw[kh * 3 + kw: kh * 3 + kw + 1, :]
            acc = term if acc is None else acc + term
    yd = _relu6(acc + bd_ref[...])
    yp = jnp.dot(yd.reshape(Hout * Wout, Cmid), w_p_ref[...],
                 preferred_element_type=jnp.float32)
    out_ref[0] = (yp + bp_ref[...]).reshape(Hout, Wout, Cout).astype(out_ref.dtype)


def _expanded_conv_strided(x_nchw, params, *, stride, dilation, expand_ratio,
                           Hout, Wout):
    N, Cin, H, W = x_nchw.shape
    Cmid = params["w_dw"].shape[0]
    Cout = params["w_proj"].shape[0]
    pad = dilation
    x = jnp.transpose(x_nchw, (0, 2, 3, 1))                              # NCHW -> NHWC
    w_e = (params["w_expand"] * params["scale_e"]).T.astype(jnp.float32)  # (Cin, Cmid)
    be = params["bias_e"].T.astype(jnp.float32)
    w_dw = (params["w_dw"] * params["scale_d"]).T.astype(jnp.float32)     # (9, Cmid)
    bd = params["bias_d"].T.astype(jnp.float32)
    w_p = (params["w_proj"] * params["scale_p"]).T.astype(jnp.float32)    # (Cmid, Cout)
    bp = params["bias_p"].T.astype(jnp.float32)

    kernel = functools.partial(
        _expanded_conv_kernel_strided,
        H=H, W=W, Cin=Cin, Cmid=Cmid, Cout=Cout,
        stride=stride, dilation=dilation, pad=pad, Hout=Hout, Wout=Wout,
        expand_ratio=expand_ratio)

    def full(a):
        return pl.BlockSpec(a.shape, lambda n, _nd=a.ndim: (0,) * _nd)

    out = pl.pallas_call(
        kernel,
        out_shape=jax.ShapeDtypeStruct((N, Hout, Wout, Cout), x_nchw.dtype),
        grid_spec=pltpu.PrefetchScalarGridSpec(
            num_scalar_prefetch=0,
            grid=(N,),
            in_specs=[pl.BlockSpec((1, H, W, Cin), lambda n: (n, 0, 0, 0)),
                      full(w_e), full(be), full(w_dw), full(bd), full(w_p), full(bp)],
            out_specs=pl.BlockSpec((1, Hout, Wout, Cout), lambda n: (n, 0, 0, 0)),
            scratch_shapes=[pltpu.VMEM((H + 2 * pad, W + 2 * pad, Cmid), jnp.float32)],
        ),
        compiler_params=pltpu.CompilerParams(
            dimension_semantics=("parallel",),
            vmem_limit_bytes=32 * 1024 * 1024),
    )(x, w_e, be, w_dw, bd, w_p, bp)
    return jnp.transpose(out, (0, 3, 1, 2))


# --------------------------------------------------------------------------------------
# Public wrapper, parameters, reference.
# --------------------------------------------------------------------------------------
def expanded_conv(x_nchw, params, *, stride=1, dilation=1, expand_ratio=6,
                  skip_connection=False, matmul_dtype=jnp.bfloat16, tile_lanes=None):
    N, Cin, H, W = x_nchw.shape
    Cout = params["w_proj"].shape[0]
    pad = dilation
    Hout = (H + 2 * pad - dilation * 2 - 1) // stride + 1
    Wout = (W + 2 * pad - dilation * 2 - 1) // stride + 1

    if skip_connection:
        assert stride == 1 and Cin == Cout, (
            "skip_connection requires stride == 1 and in_channels == out_channels")

    if stride == 1:
        return _expanded_conv_stride1(
            x_nchw, params, dilation=dilation, expand_ratio=expand_ratio,
            skip_connection=skip_connection, matmul_dtype=matmul_dtype,
            tile_lanes=tile_lanes)
    return _expanded_conv_strided(
        x_nchw, params, stride=stride, dilation=dilation,
        expand_ratio=expand_ratio, Hout=Hout, Wout=Wout)


def init_params(key, in_channels, out_channels, expand_ratio):
    """Deterministic synthetic parameters (BN folded in eval mode), (C_out, C_in)-style."""
    cmid = in_channels * expand_ratio
    k1, k2, k3 = jax.random.split(key, 3)
    eps = 1e-5
    bn_scale = 1.0 / jnp.sqrt(1.0 + eps)   # gamma=1, running_var=1
    bn_bias = 0.0                          # beta=0,  running_mean=0
    return {
        "w_expand": jax.random.normal(k1, (cmid, in_channels), jnp.float32) * 0.1,
        "scale_e": jnp.full((cmid, 1), bn_scale, jnp.float32),
        "bias_e": jnp.full((cmid, 1), bn_bias, jnp.float32),
        "w_dw": jax.random.normal(k2, (cmid, 9), jnp.float32) * 0.1,   # (C, kh*3+kw)
        "scale_d": jnp.full((cmid, 1), bn_scale, jnp.float32),
        "bias_d": jnp.full((cmid, 1), bn_bias, jnp.float32),
        "w_proj": jax.random.normal(k3, (out_channels, cmid), jnp.float32) * 0.1,
        "scale_p": jnp.full((out_channels, 1), bn_scale, jnp.float32),
        "bias_p": jnp.full((out_channels, 1), bn_bias, jnp.float32),
    }


def _reference(x_nchw, params, *, stride, dilation, expand_ratio, skip_connection):
    """Pure-JAX reference (eval-mode BN)."""
    x = jnp.transpose(x_nchw, (0, 2, 3, 1)).astype(jnp.float32)   # NHWC
    cmid = params["w_dw"].shape[0]
    if expand_ratio != 1:
        h = jnp.einsum("nhwc,dc->nhwd", x, params["w_expand"])
        h = _relu6(h * params["scale_e"][:, 0] + params["bias_e"][:, 0])
    else:
        h = x
    w_hwio = params["w_dw"].T.reshape(3, 3, 1, cmid)
    h = lax.conv_general_dilated(
        h, w_hwio, window_strides=(stride, stride),
        padding=[(dilation, dilation), (dilation, dilation)],
        rhs_dilation=(dilation, dilation),
        dimension_numbers=("NHWC", "HWIO", "NHWC"),
        feature_group_count=cmid)
    h = _relu6(h * params["scale_d"][:, 0] + params["bias_d"][:, 0])
    h = jnp.einsum("nhwc,dc->nhwd", h, params["w_proj"])
    h = h * params["scale_p"][:, 0] + params["bias_p"][:, 0]
    if skip_connection:
        h = h + x
    return jnp.transpose(h, (0, 3, 1, 2))


if __name__ == "__main__":
    key = jax.random.PRNGKey(0)
    kx, kp = jax.random.split(key)

    # Small shapes consistent with the module: batch=2, in_channels=4, spatial=16x16.
    N, Cin, H, W = 2, 4, 16, 16
    Cout = 4
    x = jax.random.normal(kx, (N, Cin, H, W), jnp.float32)
    params = init_params(kp, Cin, Cout, expand_ratio=6)
    params_e1 = init_params(kp, Cin, Cout, expand_ratio=1)

    # (params, kernel kwargs, input dtype, tolerance)
    tests = [
        (params, dict(), jnp.float32, 2e-2),                               # defaults (bf16 MXU)
        (params, dict(skip_connection=True), jnp.float32, 2e-2),
        (params, dict(dilation=2), jnp.float32, 2e-2),
        (params, dict(matmul_dtype=jnp.float32), jnp.float32, 5e-4),       # exact f32 path
        (params, dict(matmul_dtype=jnp.float32, tile_lanes=128), jnp.float32, 5e-4),
        (params, dict(matmul_dtype=jnp.float32, tile_lanes=128, dilation=2,
                      skip_connection=True), jnp.float32, 5e-4),
        (params_e1, dict(expand_ratio=1, matmul_dtype=jnp.float32), jnp.float32, 5e-4),
        (params, dict(), jnp.bfloat16, 3e-2),                              # bf16 I/O
    ]
    for prm, kw, dt, tol in tests:
        xin = x.astype(dt)
        out = jax.block_until_ready(expanded_conv(xin, prm, **kw))
        ref = _reference(xin.astype(jnp.float32), prm,
                         stride=kw.get("stride", 1),
                         dilation=kw.get("dilation", 1),
                         expand_ratio=kw.get("expand_ratio", 6),
                         skip_connection=kw.get("skip_connection", False))
        assert out.shape == ref.shape
        assert jnp.allclose(out.astype(jnp.float32), ref, atol=tol, rtol=tol), (
            f"mismatch vs reference: {kw}, dtype={dt}")

    print("KERNEL_OK")
</pallas_src>

<mosaic_0001>
module attributes {stable_mosaic.version = 11 : i64} {
  func.func @_expanded_conv_kernel_s1(%arg0: i32, %arg1: i32, %arg2: memref<1x4x256xf32, #tpu.memory_space<vmem>>, %arg3: memref<1x4x256xf32, #tpu.memory_space<vmem>>, %arg4: memref<1x4x256xf32, #tpu.memory_space<vmem>>, %arg5: memref<24x4xf32, #tpu.memory_space<vmem>>, %arg6: memref<24x1xf32, #tpu.memory_space<vmem>>, %arg7: memref<24x9xf32, #tpu.memory_space<vmem>>, %arg8: memref<24x1xf32, #tpu.memory_space<vmem>>, %arg9: memref<4x24xf32, #tpu.memory_space<vmem>>, %arg10: memref<4x1xf32, #tpu.memory_space<vmem>>, %arg11: memref<1x4x256xf32, #tpu.memory_space<vmem>>) attributes {dimension_semantics = [#tpu.dimension_semantics<parallel>, #tpu.dimension_semantics<parallel>], iteration_bounds = array<i64: 2, 1>, scalar_prefetch = 0 : i64, scratch_operands = 0 : i64, tpu.core_type = #tpu.core_type<tc>, window_params = [{transform_indices = @transform_0, window_bounds = array<i64: 1, 4, 256>}, {transform_indices = @transform_1, window_bounds = array<i64: 1, 4, 256>}, {transform_indices = @transform_2, window_bounds = array<i64: 1, 4, 256>}, {pipeline_mode = #tpu.pipeline_mode<synchronous>, transform_indices = @transform_3, window_bounds = array<i64: 24, 4>}, {pipeline_mode = #tpu.pipeline_mode<synchronous>, transform_indices = @transform_4, window_bounds = array<i64: 24, 1>}, {pipeline_mode = #tpu.pipeline_mode<synchronous>, transform_indices = @transform_5, window_bounds = array<i64: 24, 9>}, {pipeline_mode = #tpu.pipeline_mode<synchronous>, transform_indices = @transform_6, window_bounds = array<i64: 24, 1>}, {pipeline_mode = #tpu.pipeline_mode<synchronous>, transform_indices = @transform_7, window_bounds = array<i64: 4, 24>}, {pipeline_mode = #tpu.pipeline_mode<synchronous>, transform_indices = @transform_8, window_bounds = array<i64: 4, 1>}, {transform_indices = @transform_9, window_bounds = array<i64: 1, 4, 256>}]} {
    %c0 = arith.constant 0 : index
    %c0_0 = arith.constant 0 : index
    %c0_1 = arith.constant 0 : index
    %0 = vector.load %arg3[%c0, %c0_0, %c0_1] : memref<1x4x256xf32, #tpu.memory_space<vmem>>, vector<1x4x256xf32>
    %1 = vector.shape_cast %0 : vector<1x4x256xf32> to vector<4x256xf32>
    %c0_2 = arith.constant 0 : index
    %c0_3 = arith.constant 0 : index
    %c0_4 = arith.constant 0 : index
    %2 = vector.load %arg2[%c0_2, %c0_3, %c0_4] : memref<1x4x256xf32, #tpu.memory_space<vmem>>, vector<1x4x256xf32>
    %3 = vector.shape_cast %2 : vector<1x4x256xf32> to vector<4x256xf32>
    %4 = vector.extract_strided_slice %3 {offsets = [0, 239], sizes = [4, 17], strides = [1, 1]} : vector<4x256xf32> to vector<4x17xf32>
    %c0_5 = arith.constant 0 : index
    %c0_6 = arith.constant 0 : index
    %c0_7 = arith.constant 0 : index
    %5 = vector.load %arg4[%c0_5, %c0_6, %c0_7] : memref<1x4x256xf32, #tpu.memory_space<vmem>>, vector<1x4x256xf32>
    %6 = vector.shape_cast %5 : vector<1x4x256xf32> to vector<4x256xf32>
    %7 = vector.extract_strided_slice %6 {offsets = [0, 0], sizes = [4, 17], strides = [1, 1]} : vector<4x256xf32> to vector<4x17xf32>
    %8 = tpu.concatenate %4, %1, %7 in 1 : vector<4x17xf32>, vector<4x256xf32>, vector<4x17xf32> -> vector<4x290xf32>
    %c0_8 = arith.constant 0 : index
    %c0_9 = arith.constant 0 : index
    %9 = vector.load %arg5[%c0_8, %c0_9] : memref<24x4xf32, #tpu.memory_space<vmem>>, vector<24x4xf32>
    %10 = vector.extract_strided_slice %9 {offsets = [0, 0], sizes = [24, 1], strides = [1, 1]} : vector<24x4xf32> to vector<24x1xf32>
    %11 = vector.extract_strided_slice %8 {offsets = [0, 0], sizes = [1, 290], strides = [1, 1]} : vector<4x290xf32> to vector<1x290xf32>
    %12 = vector.broadcast %10 : vector<24x1xf32> to vector<24x290xf32>
    %13 = vector.broadcast %11 : vector<1x290xf32> to vector<24x290xf32>
    %14 = arith.mulf %12, %13 : vector<24x290xf32>
    %15 = vector.extract_strided_slice %9 {offsets = [0, 1], sizes = [24, 1], strides = [1, 1]} : vector<24x4xf32> to vector<24x1xf32>
    %16 = vector.extract_strided_slice %8 {offsets = [1, 0], sizes = [1, 290], strides = [1, 1]} : vector<4x290xf32> to vector<1x290xf32>
    %17 = vector.broadcast %15 : vector<24x1xf32> to vector<24x290xf32>
    %18 = vector.broadcast %16 : vector<1x290xf32> to vector<24x290xf32>
    %19 = arith.mulf %17, %18 : vector<24x290xf32>
    %20 = arith.addf %14, %19 : vector<24x290xf32>
    %21 = vector.extract_strided_slice %9 {offsets = [0, 2], sizes = [24, 1], strides = [1, 1]} : vector<24x4xf32> to vector<24x1xf32>
    %22 = vector.extract_strided_slice %8 {offsets = [2, 0], sizes = [1, 290], strides = [1, 1]} : vector<4x290xf32> to vector<1x290xf32>
    %23 = vector.broadcast %21 : vector<24x1xf32> to vector<24x290xf32>
    %24 = vector.broadcast %22 : vector<1x290xf32> to vector<24x290xf32>
    %25 = arith.mulf %23, %24 : vector<24x290xf32>
    %26 = arith.addf %20, %25 : vector<24x290xf32>
    %27 = vector.extract_strided_slice %9 {offsets = [0, 3], sizes = [24, 1], strides = [1, 1]} : vector<24x4xf32> to vector<24x1xf32>
    %28 = vector.extract_strided_slice %8 {offsets = [3, 0], sizes = [1, 290], strides = [1, 1]} : vector<4x290xf32> to vector<1x290xf32>
    %29 = vector.broadcast %27 : vector<24x1xf32> to vector<24x290xf32>
    %30 = vector.broadcast %28 : vector<1x290xf32> to vector<24x290xf32>
    %31 = arith.mulf %29, %30 : vector<24x290xf32>
    %32 = arith.addf %26, %31 : vector<24x290xf32>
    %c0_10 = arith.constant 0 : index
    %c0_11 = arith.constant 0 : index
    %33 = vector.load %arg6[%c0_10, %c0_11] : memref<24x1xf32, #tpu.memory_space<vmem>>, vector<24x1xf32>
    %34 = vector.broadcast %33 : vector<24x1xf32> to vector<24x290xf32>
    %35 = arith.addf %32, %34 : vector<24x290xf32>
    %cst = arith.constant 0.000000e+00 : f32
    %cst_12 = arith.constant 6.000000e+00 : f32
    %36 = vector.broadcast %cst : f32 to vector<24x290xf32>
    %37 = arith.maximumf %36, %35 : vector<24x290xf32>
    %38 = vector.broadcast %cst_12 : f32 to vector<24x290xf32>
    %39 = arith.minimumf %38, %37 : vector<24x290xf32>
    %40 = tpu.iota {dimensions = array<i32: 1>} : vector<1x290xi32>
    %c256_i32 = arith.constant 256 : i32
    %41 = arith.muli %arg1, %c256_i32 : i32
    %c17_i32 = arith.constant 17 : i32
    %42 = arith.subi %41, %c17_i32 : i32
    %43 = vector.broadcast %42 : i32 to vector<1x290xi32>
    %44 = arith.addi %43, %40 : vector<1x290xi32>
    %c0_i32 = arith.constant 0 : i32
    %45 = vector.broadcast %c0_i32 : i32 to vector<1x290xi32>
    %46 = arith.cmpi sge, %44, %45 : vector<1x290xi32>
    %c256_i32_13 = arith.constant 256 : i32
    %47 = vector.broadcast %c256_i32_13 : i32 to vector<1x290xi32>
    %48 = arith.cmpi slt, %44, %47 : vector<1x290xi32>
    %49 = arith.andi %46, %48 : vector<1x290xi1>
    %50 = arith.extui %49 : vector<1x290xi1> to vector<1x290xi32>
    %51 = arith.sitofp %50 : vector<1x290xi32> to vector<1x290xf32>
    %52 = vector.broadcast %51 : vector<1x290xf32> to vector<24x290xf32>
    %53 = arith.mulf %39, %52 : vector<24x290xf32>
    %54 = tpu.iota {dimensions = array<i32: 1>} : vector<1x256xi32>
    %c16_i32 = arith.constant 16 : i32
    %c0_i32_14 = arith.constant 0 : i32
    %55 = arith.cmpi eq, %c16_i32, %c0_i32_14 : i32
    %c1_i32 = arith.constant 1 : i32
    %56 = arith.select %55, %c1_i32, %c16_i32 : i32
    %57 = vector.broadcast %56 : i32 to vector<1x256xi32>
    %58 = arith.remsi %54, %57 : vector<1x256xi32>
    %c0_i32_15 = arith.constant 0 : i32
    %59 = vector.broadcast %c0_i32_15 : i32 to vector<1x256xi32>
    %60 = arith.cmpi ne, %58, %59 : vector<1x256xi32>
    %c0_i32_16 = arith.constant 0 : i32
    %61 = vector.broadcast %c0_i32_16 : i32 to vector<1x256xi32>
    %62 = arith.cmpi slt, %58, %61 : vector<1x256xi32>
    %c0_i32_17 = arith.constant 0 : i32
    %63 = arith.cmpi slt, %56, %c0_i32_17 : i32
    %64 = vector.broadcast %63 : i1 to vector<1x256xi1>
    %65 = vector.broadcast %64 : vector<1x256xi1> to vector<1x256xi1>
    %66 = arith.xori %62, %65 : vector<1x256xi1>
    %67 = arith.andi %66, %60 : vector<1x256xi1>
    %68 = vector.broadcast %56 : i32 to vector<1x256xi32>
    %69 = arith.addi %58, %68 : vector<1x256xi32>
    %70 = arith.select %67, %69, %58 : vector<1x256xi1>, vector<1x256xi32>
    %c1_i32_18 = arith.constant 1 : i32
    %71 = vector.broadcast %c1_i32_18 : i32 to vector<1x256xi32>
    %72 = arith.cmpi sge, %70, %71 : vector<1x256xi32>
    %73 = arith.extui %72 : vector<1x256xi1> to vector<1x256xi32>
    %74 = arith.sitofp %73 : vector<1x256xi32> to vector<1x256xf32>
    %c15_i32 = arith.constant 15 : i32
    %75 = vector.broadcast %c15_i32 : i32 to vector<1x256xi32>
    %76 = arith.cmpi slt, %70, %75 : vector<1x256xi32>
    %77 = arith.extui %76 : vector<1x256xi1> to vector<1x256xi32>
    %78 = arith.sitofp %77 : vector<1x256xi32> to vector<1x256xf32>
    %c0_19 = arith.constant 0 : index
    %c0_20 = arith.constant 0 : index
    %79 = vector.load %arg7[%c0_19, %c0_20] : memref<24x9xf32, #tpu.memory_space<vmem>>, vector<24x9xf32>
    %80 = vector.extract_strided_slice %53 {offsets = [0, 0], sizes = [24, 258], strides = [1, 1]} : vector<24x290xf32> to vector<24x258xf32>
    %81 = vector.extract_strided_slice %80 {offsets = [0, 0], sizes = [24, 256], strides = [1, 1]} : vector<24x258xf32> to vector<24x256xf32>
    %82 = vector.broadcast %74 : vector<1x256xf32> to vector<24x256xf32>
    %83 = arith.mulf %81, %82 : vector<24x256xf32>
    %84 = vector.extract_strided_slice %79 {offsets = [0, 0], sizes = [24, 1], strides = [1, 1]} : vector<24x9xf32> to vector<24x1xf32>
    %85 = vector.broadcast %84 : vector<24x1xf32> to vector<24x256xf32>
    %86 = arith.mulf %83, %85 : vector<24x256xf32>
    %87 = vector.extract_strided_slice %80 {offsets = [0, 1], sizes = [24, 256], strides = [1, 1]} : vector<24x258xf32> to vector<24x256xf32>
    %88 = vector.extract_strided_slice %79 {offsets = [0, 1], sizes = [24, 1], strides = [1, 1]} : vector<24x9xf32> to vector<24x1xf32>
    %89 = vector.broadcast %88 : vector<24x1xf32> to vector<24x256xf32>
    %90 = arith.mulf %87, %89 : vector<24x256xf32>
    %91 = arith.addf %86, %90 : vector<24x256xf32>
    %92 = vector.extract_strided_slice %80 {offsets = [0, 2], sizes = [24, 256], strides = [1, 1]} : vector<24x258xf32> to vector<24x256xf32>
    %93 = vector.broadcast %78 : vector<1x256xf32> to vector<24x256xf32>
    %94 = arith.mulf %92, %93 : vector<24x256xf32>
    %95 = vector.extract_strided_slice %79 {offsets = [0, 2], sizes = [24, 1], strides = [1, 1]} : vector<24x9xf32> to vector<24x1xf32>
    %96 = vector.broadcast %95 : vector<24x1xf32> to vector<24x256xf32>
    %97 = arith.mulf %94, %96 : vector<24x256xf32>
    %98 = arith.addf %91, %97 : vector<24x256xf32>
    %99 = vector.extract_strided_slice %53 {offsets = [0, 16], sizes = [24, 258], strides = [1, 1]} : vector<24x290xf32> to vector<24x258xf32>
    %100 = vector.extract_strided_slice %99 {offsets = [0, 0], sizes = [24, 256], strides = [1, 1]} : vector<24x258xf32> to vector<24x256xf32>
    %101 = vector.broadcast %74 : vector<1x256xf32> to vector<24x256xf32>
    %102 = arith.mulf %100, %101 : vector<24x256xf32>
    %103 = vector.extract_strided_slice %79 {offsets = [0, 3], sizes = [24, 1], strides = [1, 1]} : vector<24x9xf32> to vector<24x1xf32>
    %104 = vector.broadcast %103 : vector<24x1xf32> to vector<24x256xf32>
    %105 = arith.mulf %102, %104 : vector<24x256xf32>
    %106 = arith.addf %98, %105 : vector<24x256xf32>
    %107 = vector.extract_strided_slice %99 {offsets = [0, 1], sizes = [24, 256], strides = [1, 1]} : vector<24x258xf32> to vector<24x256xf32>
    %108 = vector.extract_strided_slice %79 {offsets = [0, 4], sizes = [24, 1], strides = [1, 1]} : vector<24x9xf32> to vector<24x1xf32>
    %109 = vector.broadcast %108 : vector<24x1xf32> to vector<24x256xf32>
    %110 = arith.mulf %107, %109 : vector<24x256xf32>
    %111 = arith.addf %106, %110 : vector<24x256xf32>
    %112 = vector.extract_strided_slice %99 {offsets = [0, 2], sizes = [24, 256], strides = [1, 1]} : vector<24x258xf32> to vector<24x256xf32>
    %113 = vector.broadcast %78 : vector<1x256xf32> to vector<24x256xf32>
    %114 = arith.mulf %112, %113 : vector<24x256xf32>
    %115 = vector.extract_strided_slice %79 {offsets = [0, 5], sizes = [24, 1], strides = [1, 1]} : vector<24x9xf32> to vector<24x1xf32>
    %116 = vector.broadcast %115 : vector<24x1xf32> to vector<24x256xf32>
    %117 = arith.mulf %114, %116 : vector<24x256xf32>
    %118 = arith.addf %111, %117 : vector<24x256xf32>
    %119 = vector.extract_strided_slice %53 {offsets = [0, 32], sizes = [24, 258], strides = [1, 1]} : vector<24x290xf32> to vector<24x258xf32>
    %120 = vector.extract_strided_slice %119 {offsets = [0, 0], sizes = [24, 256], strides = [1, 1]} : vector<24x258xf32> to vector<24x256xf32>
    %121 = vector.broadcast %74 : vector<1x256xf32> to vector<24x256xf32>
    %122 = arith.mulf %120, %121 : vector<24x256xf32>
    %123 = vector.extract_strided_slice %79 {offsets = [0, 6], sizes = [24, 1], strides = [1, 1]} : vector<24x9xf32> to vector<24x1xf32>
    %124 = vector.broadcast %123 : vector<24x1xf32> to vector<24x256xf32>
    %125 = arith.mulf %122, %124 : vector<24x256xf32>
    %126 = arith.addf %118, %125 : vector<24x256xf32>
    %127 = vector.extract_strided_slice %119 {offsets = [0, 1], sizes = [24, 256], strides = [1, 1]} : vector<24x258xf32> to vector<24x256xf32>
    %128 = vector.extract_strided_slice %79 {offsets = [0, 7], sizes = [24, 1], strides = [1, 1]} : vector<24x9xf32> to vector<24x1xf32>
    %129 = vector.broadcast %128 : vector<24x1xf32> to vector<24x256xf32>
    %130 = arith.mulf %127, %129 : vector<24x256xf32>
    %131 = arith.addf %126, %130 : vector<24x256xf32>
    %132 = vector.extract_strided_slice %119 {offsets = [0, 2], sizes = [24, 256], strides = [1, 1]} : vector<24x258xf32> to vector<24x256xf32>
    %133 = vector.broadcast %78 : vector<1x256xf32> to vector<24x256xf32>
    %134 = arith.mulf %132, %133 : vector<24x256xf32>
    %135 = vector.extract_strided_slice %79 {offsets = [0, 8], sizes = [24, 1], strides = [1, 1]} : vector<24x9xf32> to vector<24x1xf32>
    %136 = vector.broadcast %135 : vector<24x1xf32> to vector<24x256xf32>
    %137 = arith.mulf %134, %136 : vector<24x256xf32>
    %138 = arith.addf %131, %137 : vector<24x256xf32>
    %c0_21 = arith.constant 0 : index
    %c0_22 = arith.constant 0 : index
    %139 = vector.load %arg8[%c0_21, %c0_22] : memref<24x1xf32, #tpu.memory_space<vmem>>, vector<24x1xf32>
    %140 = vector.broadcast %139 : vector<24x1xf32> to vector<24x256xf32>
    %141 = arith.addf %138, %140 : vector<24x256xf32>
    %cst_23 = arith.constant 0.000000e+00 : f32
    %cst_24 = arith.constant 6.000000e+00 : f32
    %142 = vector.broadcast %cst_23 : f32 to vector<24x256xf32>
    %143 = arith.maximumf %142, %141 : vector<24x256xf32>
    %144 = vector.broadcast %cst_24 : f32 to vector<24x256xf32>
    %145 = arith.minimumf %144, %143 : vector<24x256xf32>
    %c0_25 = arith.constant 0 : index
    %c0_26 = arith.constant 0 : index
    %146 = vector.load %arg9[%c0_25, %c0_26] : memref<4x24xf32, #tpu.memory_space<vmem>>, vector<4x24xf32>
    %147 = arith.truncf %146 : vector<4x24xf32> to vector<4x24xbf16>
    %148 = arith.truncf %145 : vector<24x256xf32> to vector<24x256xbf16>
    %cst_27 = arith.constant dense<0.000000e+00> : vector<4x256xf32>
    %149 = tpu.matmul %147, %148, %cst_27 {dimension_numbers = #tpu.dot_dimension_numbers<[1], [0], [0], [1], [0, 0, 1, 1], [], []>} : vector<4x24xbf16>, vector<24x256xbf16>, vector<4x256xf32> -> vector<4x256xf32>
    %c0_28 = arith.constant 0 : index
    %c0_29 = arith.constant 0 : index
    %150 = vector.load %arg10[%c0_28, %c0_29] : memref<4x1xf32, #tpu.memory_space<vmem>>, vector<4x1xf32>
    %151 = vector.broadcast %150 : vector<4x1xf32> to vector<4x256xf32>
    %152 = arith.addf %149, %151 : vector<4x256xf32>
    %c0_30 = arith.constant 0 : index
    %c0_31 = arith.constant 0 : index
    %c0_32 = arith.constant 0 : index
    %153 = vector.load %arg11[%c0_30, %c0_31, %c0_32] : memref<1x4x256xf32, #tpu.memory_space<vmem>>, vector<1x4x256xf32>
    %154 = vector.shape_cast %153 : vector<1x4x256xf32> to vector<4x256xf32>
    %155 = vector.shape_cast %152 : vector<4x256xf32> to vector<1x4x256xf32>
    tpu.vector_store %arg11[%c0_30, %c0_31, %c0_32], %155 {strides = array<i32>} : memref<1x4x256xf32, #tpu.memory_space<vmem>>, vector<1x4x256xf32>,
    return
  }
  func.func @transform_0(%arg0: i32, %arg1: i32) -> (i32, i32, i32) {
    %c1_i32 = arith.constant 1 : i32
    %0 = arith.subi %arg1, %c1_i32 : i32
    %c0_i32 = arith.constant 0 : i32
    %1 = arith.maxsi %0, %c0_i32 : i32
    %c0_i32_0 = arith.constant 0 : i32
    %c0_i32_1 = arith.constant 0 : i32
    return %arg0, %c0_i32_0, %1 : i32, i32, i32
  }
  func.func @transform_1(%arg0: i32, %arg1: i32) -> (i32, i32, i32) {
    %c0_i32 = arith.constant 0 : i32
    %c0_i32_0 = arith.constant 0 : i32
    return %arg0, %c0_i32, %arg1 : i32, i32, i32
  }
  func.func @transform_2(%arg0: i32, %arg1: i32) -> (i32, i32, i32) {
    %c1_i32 = arith.constant 1 : i32
    %0 = arith.addi %arg1, %c1_i32 : i32
    %c0_i32 = arith.constant 0 : i32
    %1 = arith.minsi %0, %c0_i32 : i32
    %c0_i32_0 = arith.constant 0 : i32
    %c0_i32_1 = arith.constant 0 : i32
    return %arg0, %c0_i32_0, %1 : i32, i32, i32
  }
  func.func @transform_3(%arg0: i32, %arg1: i32) -> (i32, i32) {
    %c0_i32 = arith.constant 0 : i32
    %c0_i32_0 = arith.constant 0 : i32
    %c0_i32_1 = arith.constant 0 : i32
    return %c0_i32, %c0_i32_0 : i32, i32
  }
  func.func @transform_4(%arg0: i32, %arg1: i32) -> (i32, i32) {
    %c0_i32 = arith.constant 0 : i32
    %c0_i32_0 = arith.constant 0 : i32
    %c0_i32_1 = arith.constant 0 : i32
    return %c0_i32, %c0_i32_0 : i32, i32
  }
  func.func @transform_5(%arg0: i32, %arg1: i32) -> (i32, i32) {
    %c0_i32 = arith.constant 0 : i32
    %c0_i32_0 = arith.constant 0 : i32
    %c0_i32_1 = arith.constant 0 : i32
    return %c0_i32, %c0_i32_0 : i32, i32
  }
  func.func @transform_6(%arg0: i32, %arg1: i32) -> (i32, i32) {
    %c0_i32 = arith.constant 0 : i32
    %c0_i32_0 = arith.constant 0 : i32
    %c0_i32_1 = arith.constant 0 : i32
    return %c0_i32, %c0_i32_0 : i32, i32
  }
  func.func @transform_7(%arg0: i32, %arg1: i32) -> (i32, i32) {
    %c0_i32 = arith.constant 0 : i32
    %c0_i32_0 = arith.constant 0 : i32
    %c0_i32_1 = arith.constant 0 : i32
    return %c0_i32, %c0_i32_0 : i32, i32
  }
  func.func @transform_8(%arg0: i32, %arg1: i32) -> (i32, i32) {
    %c0_i32 = arith.constant 0 : i32
    %c0_i32_0 = arith.constant 0 : i32
    %c0_i32_1 = arith.constant 0 : i32
    return %c0_i32, %c0_i32_0 : i32, i32
  }
  func.func @transform_9(%arg0: i32, %arg1: i32) -> (i32, i32, i32) {
    %c0_i32 = arith.constant 0 : i32
    %c0_i32_0 = arith.constant 0 : i32
    return %arg0, %c0_i32, %arg1 : i32, i32, i32
  }
}

</mosaic_0001>

<bundles_post_ra>
// kernel: tpu_custom_call.1
= control target key start
LH: loop header
LB: loop body
LE: loop exit
PB: predicated region body
PF: predicated region fallthrough
CT: control target
= control target key end

     0   :  { %14 = vsyncpa [#allocation3], 0  ;;  %s2862_s0 = inlined_call_operand.vmem [shape: f32[2,4,256], index: 0, kind: input, shape index: {}]   ;;  %s2863_s1 = inlined_call_operand.vmem [shape: f32[2,4,256], index: 1, kind: input, shape index: {}]   ;;  %s2864_s2 = inlined_call_operand.vmem [shape: f32[2,4,256], index: 2, kind: input, shape index: {}]   ;;  %s2865_s3 = inlined_call_operand.vmem [shape: f32[24,4], index: 3, kind: input, shape index: {}]   ;;  %s2866_s4 = inlined_call_operand.vmem [shape: f32[24,1], index: 4, kind: input, shape index: {}]   ;;  %s2867_s5 = inlined_call_operand.vmem [shape: f32[24,9], index: 5, kind: input, shape index: {}]   ;;  %s2868_s6 = inlined_call_operand.vmem [shape: f32[24,1], index: 6, kind: input, shape index: {}]   ;;  %s2869_s7 = inlined_call_operand.vmem [shape: f32[4,24], index: 7, kind: input, shape index: {}]   ;;  %s2870_s8 = inlined_call_operand.vmem [shape: f32[4,1], index: 8, kind: input, shape index: {}]   ;;  %s2871_s9 = inlined_call_operand.hbm [shape: f32[2,4,256], index: 9, kind: output, shape index: {}]  }
   0x1   :  { %16 = vsyncpa [#allocation3 + $0x1], 0  ;;  %s1989_s30 = smov 0   ;;  %s1991_s10 = smov 0  }
   0x2   :  { %s1993_s11 = smov 0   ;;  %s1995_s12 = smov 0  }
   0x3   :  { %s1997_s13 = smov 0   ;;  %s1999_s14 = smov 0  }
   0x4 LB: > { %s1676_s15 = sadd.s32 4294967295, %s1912_s14   ;;  %s1677_s16 = sadd.s32 4294967294, %s1912_s14   ;;  %s1912_s14 = sphi %s1999_s14, %s22_s14   ;;  %s1908_s13 = sphi %s1997_s13, %s2887_s13   ;;  %s1904_s12 = sphi %s1995_s12, %s2886_s12   ;;  %s1900_s11 = sphi %s1993_s11, %s2885_s11   ;;  %s1896_s10 = sphi %s1991_s10, %s2884_s10   ;;  %s1892_s30 = sphi %s1989_s30, %s2883_s30  }
   0x5   : > { %s34_s17 = sadd.s32 1, %s1908_s13  ;;  %s265_s18 = sadd.s32 1, %s1900_s11 }
   0x6   : > { %p36_p0 = scmp.ge.s32.totalorder %s34_s17, 2  ;;  %p275_p1 = scmp.ne.s32.totalorder %s1900_s11, %s1896_s10 }
   0x7   : > { %p276_p2 = scmp.eq.s32.totalorder %s1676_s15, 1  ;;  %p281_p3 = scmp.ne.s32.totalorder %s1896_s10, %s1892_s30 }
   0x8   : > { %s2889_s17 = smov (%p36_p0, %s34_s17), 0  ;;  %p282_p5 = scmp.eq.s32.totalorder %s1677_s16, 1 }
   0x9   : > { %p2029_p4 = por %p276_p2, %p275_p1  ;;  %s260_s20 = ssub.s32 %s1908_s13, %s2889_s17 }
   0xa   : > { %p1680_p6 = scmp.ge.s32.totalorder %s1912_s14, 1  ;;  %p263_p7 = scmp.eq.s32.totalorder %s260_s20, 0 }
   0xb   : > { %p2036_p8 = por %p282_p5, %p281_p3  ;;  %p369_p9 = scmp.lt.s32.totalorder %s1912_s14, 3 }
   0xc   : > { %s2042_s22 = scalar_select %p263_p7, %s1900_s11, %s265_s18  }
   0xd   : > { %p370_p10 = pnand %p1680_p6, %p369_p9 }
   0xf   : > { %373 = sbr.rel (%p370_p10) target bundleno = 756 (0x2f4), region = 56 }
  0x16   : > { %v2047_v0 = vld [vmem:[%s2865_s3] sm:$0xff]  ;;  %p437_p11 = scmp.lt.s32.totalorder %s1904_s12, 1  ;;  %v520_v1 = vlaneseq  ;;  %v1914_v2 = vmov 2   ;;  %v1915_v3 = vmov 1   ;;  %v2061_v5 = vld [vmem:[%s2865_s3 + $0x8] sm:$0xff]  ;;  %v1916_v6 = vmov 0  }
  0x17   : > { %1785 = vset.pattern.permute.xlu0 %v1914_v2  ;;  %1784 = vset.pattern.permute.xlu1 %v1915_v3  ;;  %s1917_s27 = smov 17   ;;  %v1918_v13 = vmov 0.0   ;;  %v504_v18 = vld [vmem:[%s2865_s3 + $0x10] sm:$0xff]  ;;  %v2097_v19 = vld [vmem:[%s2867_s5 + $0x8] sm:$0xff]  ;;  %v1919_v20 = vmov 3   ;;  %v667_v22 = vld [vmem:[%s2866_s4] sm:$0xff] }
  0x18   : > { %584 = vperm.xlu0 %1785, %v2047_v0   ;;  %542 = vperm.xlu1 %1784, %v2047_v0   ;;  %s438_s25 = scalar_select %p437_p11, %s1904_s12, 1  ;;  %v2056_v4 = vand.u32 127, %v520_v1  ;;  %v2104_v21 = vld [vmem:[%s2867_s5 + $0x10] sm:$0xff]  ;;  %v2116_v23 = vld [vmem:[%s2867_s5] sm:$0xff]  ;;  %v1920_v24 = vmov 4   ;;  %v1922_v31 = vmov 6  }
  0x19   : > { %1533 = vmatprep.mubr.bf16.mxu0 %v1916_v6  ;;  %v669_v27 = vld [vmem:[%s2866_s4 + $0x10] sm:$0xff]  ;;  %s1921_s29 = smov 18   ;;  %v1923_v32 = vmov 7   ;;  %s1924_s15 = smov 2   ;;  %v668_v33 = vld [vmem:[%s2866_s4 + $0x8] sm:$0xff]  ;;  %v1926_v37 = vmov 5  }
  0x1a   : > { %s1701_s28 = sshll.u32 %s438_s25, 3  ;;  %v2065_v7 = vadd.s32 128, %v2056_v4  ;;  %v750_v8 = vand.u32 15, %v2056_v4  ;;  %v715_v25 = vadd.s32 256, %v2056_v4  ;;  %v719_v26 = vadd.s32 4294967279, %v2056_v4  ;;  %s1925_s20 = smov 16  }
  0x1b   : > { %s470_s16 = scalar_lea.vmem %s2864_s2, %s1701_s28  ;;  %s444_s23 = scalar_lea.vmem %s2862_s0, %s1701_s28  ;;  %v1928_v38 = vmov 8   ;;  %v521_v49 = vshrl.u32 %v520_v1, 7  ;;  %vm491_vm6 = vcmask 138240   ;;  %vm1124_vm7 = vcmask 146432  }
  0x1c   : > { %546 = vperm.xlu1 %1784, %v2061_v5   ;;  %v479_v9 = vld [vmem:[%s470_s16] sm:$0xff]  ;;  %s457_s25 = scalar_lea.vmem %s2863_s1, %s1701_s28  ;;  %v757_v10 = vand.u32 15, %v2065_v7  ;;  %vm776_vm0 = vcmp.lt.s32.totalorder %v750_v8, 15  ;;  %v721_v28 = vadd.s32 4294967279, %v715_v25  ;;  %vm722_vm2 = vcmp.ge.s32.totalorder %v719_v26, 0  ;;  %s1929_s24 = smov 34  }
  0x1d   : > { %497 = vrot.lane.b32.xlu0 %v479_v9, %s1917_s27  ;;  %v1832_v11 = vld [vmem:[%s444_s23 + $0x4] ss:$0 sps:$4 sm:$0xff]   ;;  %v1692_v14 = vsel %vm776_vm0, 1.0, %v1918_v13  ;;  %v2126_v29 = vsel %vm722_vm2, 1.0, %v1918_v13  ;;  %vm770_vm4 = vcmp.ge.s32.totalorder %v750_v8, 1  ;;  %s1927_s23 = smov 32  }
  0x1e   : > { %v477_v12 = vld [vmem:[%s457_s25] sm:$0xff]  ;;  %vm777_vm1 = vcmp.lt.s32.totalorder %v757_v10, 15  ;;  %vm727_vm3 = vcmp.lt.s32.totalorder %v721_v28, 256  ;;  %vm771_vm5 = vcmp.ge.s32.totalorder %v757_v10, 1  ;;  %v2156_v34 = vsel %vm770_vm4, 1.0, %v1918_v13  ;;  %s1930_s26 = smov 127  }
  0x1f   : > { %v1693_v15 = vsel %vm777_vm1, 1.0, %v1918_v13  ;;  %v486_v16 = vcombine.high %v477_v12, %v477_v12  ;;  %v2130_v30 = vsel %vm727_vm3, 1.0, %v1918_v13  ;;  %v2159_v35 = vsel %vm771_vm5, 1.0, %v1918_v13  ;;  %s1931_s25 = smov 126   ;;  %s1933_s28 = smov 111  }
  0x20   : > { %1786 = vset.pattern.permute.xlu1 %v1914_v2  ;;  %v2087_v17 = vpack.i.bf16 %v1693_v15, %v1692_v14  ;;  %v1802_v36 = vpack.i.bf16 %v2159_v35, %v2156_v34  ;;  %v522_v52 = vsub.s32 0, %v521_v49  ;;  %v555_v54 = vsub.s32 1, %v521_v49  ;;  %s430_s18 = sand.u32 1, %s1896_s10  }
  0x21   : > { %588 = vperm.xlu1 %1786, %v2061_v5   ;;  %482 = vrot.lane.b32.xlu0 %v1832_v11, %s1917_s27  ;;  %v597_v58 = vsub.s32 2, %v521_v49  ;;  %v639_v61 = vsub.s32 3, %v521_v49  ;;  %vm885_vm8 = vcmask 15360   ;;  %vm972_vm9 = vcmask 130048  }
  0x22   : > { %vm1209_vm10 = vcmask 261120   ;;  %vm1361_vm11 = vcmask 277504   ;;  %vm860_vm12 = vcmask 1039360   ;;  %vm947_vm13 = vcmask 1031168  }
  0x23   : > { %vm1034_vm14 = vcmask 916480   ;;  %vm1101_vm15 = vcmask 908288   ;;  %vm1186_vm0 = vcmask 900096   ;;  %vm1271_vm1 = vcmask 785408  }
  0x24   : > { %vm1338_vm2 = vcmask 777216   ;;  %vm1423_vm3 = vcmask 769024   ;;  %vm1494_vm4 = vcmask 1043456   ;;  %vm1490_vm5 = vcmask 195584  }
  0x25   : > { %489 = vrot.lane.b32.xlu1 %v486_v16, %s1917_s27  ;;  %592 = vperm.xlu0 %1785, %v504_v18  }
  0x26   : > { %1787 = vset.pattern.permute.xlu1 %v1916_v6 }
  0x29   : > { %517 = vperm.xlu1 %1787, %v504_v18   ;;  %1789 = vset.pattern.permute.xlu0 %v1915_v3 }
  0x2a   : > { %550 = vperm.xlu0 %1789, %v504_v18  }
  0x2d   : > { %1788 = vset.pattern.permute.xlu1 %v1919_v20 }
  0x2e   : > { %626 = vperm.xlu1 %1788, %v2047_v0   ;;  %817 = vperm.xlu0 %1789, %v2097_v19  }
  0x32   : > { %630 = vperm.xlu1 %1788, %v2061_v5   ;;  %821 = vperm.xlu0 %1789, %v2104_v21  }
  0x36   : > { %487 = vrot.lane.b32.xlu1 %v477_v12, %s1917_s27  ;;  %1794 = vset.pattern.permute.xlu0 %v1919_v20  ;;  %s1932_s27 = smov 112  }
  0x37   : > { %991 = vperm.xlu0 %1794, %v2097_v19  }
  0x3a   : > { %634 = vperm.xlu1 %1788, %v504_v18  }
  0x3b   : > { %995 = vperm.xlu0 %1794, %v2104_v21  }
  0x3e   : > { %1790 = vset.pattern.permute.xlu1 %v1916_v6 }
  0x3f   : > { %672 = vperm.xlu1 %1790, %v667_v22   ;;  %1807 = vset.pattern.permute.xlu0 %v1920_v24 }
  0x40   : > { %1054 = vperm.xlu0 %1807, %v2116_v23  }
  0x43   : > { %682 = vperm.xlu1 %1790, %v669_v27  }
  0x44   : > { %1062 = vperm.xlu0 %1807, %v2104_v21  }
  0x47   : > { %1791 = vset.pattern.permute.xlu1 %v1915_v3 }
  0x48   : > { %813 = vperm.xlu1 %1791, %v2116_v23   ;;  %1811 = vrot.lane.b32.xlu0 %v2087_v17, %s1921_s29  ;;  %s1934_s29 = smov 110  }
  0x49   : > { %1822 = vset.pattern.permute.xlu0 %v1922_v31 }
  0x4c   : > { %1792 = vset.pattern.permute.xlu1 %v1914_v2  ;;  %1232 = vperm.xlu0 %1822, %v2104_v21  }
  0x4d   : > { %900 = vperm.xlu1 %1792, %v2116_v23  }
  0x50   : > { %1823 = vset.pattern.permute.xlu0 %v1923_v32 }
  0x51   : > { %904 = vperm.xlu1 %1792, %v2097_v19   ;;  %1291 = vperm.xlu0 %1823, %v2116_v23  }
  0x55   : > { %1793 = vset.pattern.permute.xlu1 %v1919_v20  ;;  %1299 = vperm.xlu0 %1823, %v2104_v21  }
  0x56   : > { %987 = vperm.xlu1 %1793, %v2116_v23  }
  0x59   : > { %1825 = vset.pattern.permute.xlu0 %v1916_v6 }
  0x5a   : > { %1796 = vrot.lane.b32.xlu1 %v2087_v17, %s1924_s15  ;;  %507 = vperm.xlu0 %1825, %v2047_v0   ;;  %s1935_s15 = smov 96  }
  0x5b   : > { %1800 = vset.pattern.permute.xlu1 %v1914_v2 }
  0x5e   : > { %908 = vperm.xlu1 %1800, %v2104_v21   ;;  %512 = vperm.xlu0 %1825, %v2061_v5  }
  0x62   : > { %1801 = vset.pattern.permute.xlu1 %v1920_v24  ;;  %677 = vperm.xlu0 %1825, %v668_v33  }
  0x63   : > { %1058 = vperm.xlu1 %1801, %v2097_v19  }
  0x66   : > { %793 = vperm.xlu0 %1825, %v2116_v23  }
  0x67   : > { %1803 = vrot.lane.b32.xlu1 %v1802_v36, %s1925_s20  ;;  %s1681_s20 = sshll.u32 %s430_s18, 3 }
  0x68   : > { %1808 = vset.pattern.permute.xlu1 %v1926_v37 }
  0x6b   : > { %1139 = vperm.xlu1 %1808, %v2116_v23  }
  0x6f   : > { %1143 = vperm.xlu1 %1808, %v2097_v19  }
  0x73   : > { %1809 = vset.pattern.permute.xlu1 %v1922_v31 }
  0x74   : > { %1224 = vperm.xlu1 %1809, %v2116_v23  }
  0x78   : > { %1228 = vperm.xlu1 %1809, %v2097_v19  }
  0x7c   : > { %1815 = vset.pattern.permute.xlu1 %v1926_v37 }
  0x7d   : > { %1147 = vperm.xlu1 %1815, %v2104_v21  }
  0x81   : > { %1816 = vset.pattern.permute.xlu1 %v1923_v32 }
  0x82   : > { %1295 = vperm.xlu1 %1816, %v2097_v19  }
  0x86   : > { %1818 = vrot.lane.b32.xlu1 %v1802_v36, %s1927_s23  ;;  %s1704_s23 = sshll.u32 %s1904_s12, 7  ;;  %s1938_s12 = smov [#allocation2]  }
  0x87   : > { %1824 = vset.pattern.permute.xlu1 %v1928_v38  ;;  %s1838_s16 = sshll.u32 %s1938_s12, 4  ;;  %s1839_s16 = int_to_ptr.vmem [resolvable:$false] %s1838_s16 }
  0x8a   : > { %1376 = vperm.xlu1 %1824, %v2116_v23  }
  0x8e   : > { %1380 = vperm.xlu1 %1824, %v2097_v19  }
  0x92   : > { %1827 = vrot.lane.b32.xlu1 %v2087_v17, %s1929_s24  ;;  %s1936_s24 = smov 95  }
  0x96   : > { %1384 = vperm.xlu1 %1824, %v2104_v21  }
  0x97   : > { %v2175_v39 = vpop.permute.xlu0 %584  ;;  %v2177_v40 = vpop.permute.xlu1 %542 }
  0x9a   : > { %1831 = vset.pattern.permute.xlu1 %v1916_v6 }
  0x9b   : > { %v498_v41 = vpop.permute.xlu0 %497  ;;  %798 = vperm.xlu1 %1831, %v2097_v19   ;;  %v2181_v42 = vpop.permute.xlu1 %546 }
  0x9f   : > { %803 = vperm.xlu1 %1831, %v2104_v21   ;;  %v483_v43 = vpop.permute.xlu0 %482 }
  0xa0   : > { %v2184_v44 = vpop.permute.xlu1 %588 }
  0xa4   : > { %v490_v45 = vpop.permute.xlu1 %489  ;;  %v2186_v46 = vpop.permute.xlu0 %592 }
  0xa5   : > { %v501_v53 = vsel %vm491_vm6, %v490_v45, %v498_v41 }
  0xa6   : > { %v2202_v57 = vrot.slane %v501_v53, %v522_v52  ;;  %v564_v59 = vrot.slane %v501_v53, %v555_v54  ;;  %v606_v5 = vrot.slane %v501_v53, %v597_v58  ;;  %v648_v9 = vrot.slane %v501_v53, %v639_v61 }
  0xa8   : > { %v2188_v47 = vpop.permute.xlu1 %517  ;;  %v615_v15 = vmul.f32 %v606_v5, %v2186_v46 }
  0xa9   : > { %v2190_v48 = vpop.permute.xlu0 %550  ;;  %v540_v0 = vmul.f32 %v2202_v57, %v2188_v47 }
  0xaa   : > { %v573_v1 = vmul.f32 %v564_v59, %v2190_v48 }
  0xac   : > { %v582_v11 = vadd.f32 %v573_v1, %v540_v0 }
  0xad   : > { %v2193_v50 = vpop.permute.xlu1 %626  ;;  %v2195_v51 = vpop.permute.xlu0 %817 }
  0xae   : > { %v624_v21 = vadd.f32 %v615_v15, %v582_v11 }
  0xb1   : > { %v2198_v55 = vpop.permute.xlu1 %630  ;;  %v2200_v56 = vpop.permute.xlu0 %821 }
  0xb5   : > { %v488_v60 = vpop.permute.xlu1 %487 }
  0xb6   : > { %v500_v62 = vsel %vm491_vm6, %v483_v43, %v488_v60  ;;  %v2205_v63 = vpop.permute.xlu0 %991  ;;  %v492_v0 = vsel %vm491_vm6, %v488_v60, %v490_v45  ;;  %v612_v45 = vmul.f32 %v606_v5, %v2184_v44 }
  0xb7   : > { %v2210_v2 = vrot.slane %v500_v62, %v522_v52  ;;  %v2212_v3 = vrot.slane %v500_v62, %v555_v54  ;;  %v2214_v4 = vrot.slane %v500_v62, %v597_v58  ;;  %v2224_v12 = vrot.slane %v500_v62, %v639_v61 }
  0xb8   : > { %v527_v11 = vrot.slane %v492_v0, %v522_v52  ;;  %v2268_v15 = vrot.slane %v492_v0, %v639_v61  ;;  %v651_v61 = vmul.f32 %v648_v9, %v2193_v50 }
  0xb9   : > { %v538_v6 = vmul.f32 %v2210_v2, %v2188_v47  ;;  %v571_v7 = vmul.f32 %v2212_v3, %v2190_v48  ;;  %v2220_v8 = vpop.permute.xlu1 %634  ;;  %v613_v14 = vmul.f32 %v2214_v4, %v2186_v46  ;;  %v565_v60 = vmul.f32 %v2212_v3, %v2177_v40 }
  0xba   : > { %v2222_v10 = vpop.permute.xlu0 %995  ;;  %v657_v16 = vmul.f32 %v648_v9, %v2220_v8  ;;  %v655_v19 = vmul.f32 %v2224_v12, %v2220_v8 }
  0xbb   : > { %v580_v13 = vadd.f32 %v571_v7, %v538_v6  ;;  %v560_v7 = vrot.slane %v492_v0, %v555_v54 }
  0xbc   : > { %v666_v23 = vadd.f32 %v657_v16, %v624_v21  ;;  %v570_v21 = vmul.f32 %v564_v59, %v2181_v42 }
  0xbd   : > { %v622_v17 = vadd.f32 %v613_v14, %v580_v13  ;;  %v2265_v13 = vrot.slane %v492_v0, %v597_v58  ;;  %v567_v14 = vmul.f32 %v564_v59, %v2177_v40  ;;  %v566_v52 = vmul.f32 %v560_v7, %v2177_v40 }
  0xbe   : > { %v2230_v18 = vpop.permute.xlu1 %672 }
  0xbf   : > { %v2234_v20 = vpop.permute.xlu0 %1054  ;;  %v664_v22 = vadd.f32 %v655_v19, %v622_v17  ;;  %v609_v17 = vmul.f32 %v606_v5, %v2175_v39  ;;  %v608_v59 = vmul.f32 %v2265_v13, %v2175_v39  ;;  %v649_v5 = vmul.f32 %v2224_v12, %v2193_v50 }
  0xc2   : > { %v2236_v24 = vpop.permute.xlu1 %682 }
  0xc3   : > { %v691_v25 = vadd.f32 %v2236_v24, %v664_v22  ;;  %v693_v26 = vadd.f32 %v2236_v24, %v666_v23  ;;  %v2240_v27 = vpop.permute.xlu0 %1062  ;;  %v654_v22 = vmul.f32 %v648_v9, %v2198_v55  ;;  %v607_v23 = vmul.f32 %v2214_v4, %v2175_v39 }
  0xc4   : > { %2877 = vst [vmem:[#allocation5_spill] sm:$0xff] %v2240_v27  ;;  %v568_v9 = vmul.f32 %v2212_v3, %v2181_v42 }
  0xc5   : > { %v700_v28 = vmax.f32 %v691_v25, 0.0  ;;  %v702_v31 = vmax.f32 %v693_v26, 0.0 }
  0xc7   : > { %v709_v32 = vmin.f32 %v700_v28, 6.0  ;;  %v711_v33 = vmin.f32 %v702_v31, 6.0  ;;  %v2242_v36 = vpop.permute.xlu0 %1811  ;;  %v2244_v37 = vpop.permute.xlu1 %813  ;;  %v650_v28 = vmul.f32 %v2268_v15, %v2193_v50  ;;  %v610_v50 = vmul.f32 %v2214_v4, %v2184_v44 }
  0xc9   : > { %v2247_v38 = vmul.f32 %v2126_v29, %v709_v32  ;;  %v2250_v41 = vmul.f32 %v2130_v30, %v711_v33  ;;  %v569_v33 = vmul.f32 %v560_v7, %v2181_v42 }
  0xcb   : > { %v2252_v43 = vpop.permute.xlu0 %1232 }
  0xcc   : > { %2878 = vst [vmem:[#allocation6_spill] sm:$0xff] %v2252_v43  ;;  %v2254_v49 = vpop.permute.xlu1 %900 }
  0xd0   : > { %v2256_v53 = vpop.permute.xlu0 %1291  ;;  %v2258_v62 = vpop.permute.xlu1 %904 }
  0xd4   : > { %v2261_v1 = vpop.permute.xlu0 %1299 }
  0xd5   : > { %2879 = vst [vmem:[#allocation7_spill] sm:$0xff] %v2261_v1  ;;  %v2263_v6 = vpop.permute.xlu1 %987 }
  0xd9   : > { %v2270_v16 = vpop.permute.xlu1 %1796  ;;  %v508_v19 = vpop.permute.xlu0 %507 }
  0xda   : > { %v532_v54 = vmul.f32 %v2210_v2, %v508_v19  ;;  %v533_v58 = vmul.f32 %v527_v11, %v508_v19  ;;  %v534_v25 = vmul.f32 %v2202_v57, %v508_v19 }
  0xdc   : > { %v574_v26 = vadd.f32 %v565_v60, %v532_v54  ;;  %v575_v40 = vadd.f32 %v566_v52, %v533_v58  ;;  %v576_v31 = vadd.f32 %v567_v14, %v534_v25  ;;  %v611_v14 = vmul.f32 %v2265_v13, %v2184_v44 }
  0xdd   : > { %v2290_v32 = vpop.permute.xlu1 %908  ;;  %v513_v0 = vpop.permute.xlu0 %512  ;;  %v539_v44 = vmul.f32 %v527_v11, %v2188_v47 }
  0xde   : > { %v616_v19 = vadd.f32 %v607_v23, %v574_v26  ;;  %v617_v1 = vadd.f32 %v608_v59, %v575_v40  ;;  %v535_v39 = vmul.f32 %v2210_v2, %v513_v0  ;;  %v536_v43 = vmul.f32 %v527_v11, %v513_v0 }
  0xdf   : > { %v618_v27 = vadd.f32 %v609_v17, %v576_v31  ;;  %v537_v60 = vmul.f32 %v2202_v57, %v513_v0  ;;  %v652_v23 = vmul.f32 %v2224_v12, %v2198_v55  ;;  %v653_v2 = vmul.f32 %v2268_v15, %v2198_v55 }
  0xe0   : > { %v658_v52 = vadd.f32 %v649_v5, %v616_v19  ;;  %v659_v54 = vadd.f32 %v650_v28, %v617_v1  ;;  %v577_v3 = vadd.f32 %v568_v9, %v535_v39  ;;  %v578_v58 = vadd.f32 %v569_v33, %v536_v43 }
  0xe1   : > { %v660_v42 = vadd.f32 %v651_v61, %v618_v27  ;;  %v579_v25 = vadd.f32 %v570_v21, %v537_v60  ;;  %v572_v43 = vmul.f32 %v560_v7, %v2190_v48  ;;  %v2313_v55 = vunpack.i.h.bf16 %v2242_v36  ;;  %v678_v9 = vpop.permute.xlu0 %677 }
  0xe2   : > { %v685_v57 = vadd.f32 %v2230_v18, %v658_v52  ;;  %v686_v17 = vadd.f32 %v2230_v18, %v659_v54  ;;  %v619_v4 = vadd.f32 %v610_v50, %v577_v3  ;;  %v620_v59 = vadd.f32 %v611_v14, %v578_v58  ;;  %v2307_v26 = vpop.permute.xlu1 %1058 }
  0xe3   : > { %v687_v27 = vadd.f32 %v2230_v18, %v660_v42  ;;  %v621_v1 = vadd.f32 %v612_v45, %v579_v25  ;;  %v2316_v40 = vunpack.i.l.bf16 %v2242_v36  ;;  %v581_v50 = vadd.f32 %v572_v43, %v539_v44 }
  0xe4   : > { %v694_v21 = vmax.f32 %v685_v57, 0.0  ;;  %v695_v12 = vmax.f32 %v686_v17, 0.0  ;;  %v661_v61 = vadd.f32 %v652_v23, %v619_v4  ;;  %v662_v5 = vadd.f32 %v653_v2, %v620_v59 }
  0xe5   : > { %v696_v28 = vmax.f32 %v687_v27, 0.0  ;;  %v663_v31 = vadd.f32 %v654_v22, %v621_v1  ;;  %v2332_v14 = vsel %vm1124_vm7, %v2316_v40, %v2313_v55  ;;  %v2339_v58 = vunpack.i.h.bf16 %v2270_v16 }
  0xe6   : > { %v703_v33 = vmin.f32 %v694_v21, 6.0  ;;  %v2318_v47 = vmin.f32 %v695_v12, 6.0  ;;  %v688_v48 = vadd.f32 %v678_v9, %v661_v61  ;;  %v689_v7 = vadd.f32 %v678_v9, %v662_v5  ;;  %v2320_v18 = vpop.permute.xlu1 %1803 }
  0xe7   : > { %v705_v11 = vmin.f32 %v696_v28, 6.0  ;;  %v690_v45 = vadd.f32 %v678_v9, %v663_v31  ;;  %v2349_v2 = vunpack.i.l.bf16 %v2270_v16  ;;  %v614_v16 = vmul.f32 %v2265_v13, %v2186_v46 }
  0xe8   : > { %v2323_v0 = vmul.f32 %v2126_v29, %v703_v33  ;;  %v697_v19 = vmax.f32 %v688_v48, 0.0  ;;  %v698_v39 = vmax.f32 %v689_v7, 0.0  ;;  %v825_v60 = vmul.f32 %v2244_v37, %v2318_v47 }
  0xe9   : > { %v2326_v36 = vmul.f32 %v2130_v30, %v705_v11  ;;  %v699_v22 = vmax.f32 %v690_v45, 0.0  ;;  %v623_v43 = vadd.f32 %v614_v16, %v581_v50  ;;  %v2373_v27 = vsel %vm885_vm8, %v2349_v2, %v2339_v58 }
  0xea   : > { %v706_v52 = vmin.f32 %v697_v19, 6.0  ;;  %v2334_v54 = vmin.f32 %v698_v39, 6.0  ;;  %v2336_v3 = vpop.permute.xlu1 %1139  ;;  %v2343_v25 = vmul.f32 %v2316_v40, %v2323_v0  ;;  %844 = vrot.lane.b32.xlu0 %v825_v60, %s1930_s26  ;;  %v891_v46 = vmul.f32 %v2373_v27, %v2318_v47 }
  0xeb   : > { %v708_v42 = vmin.f32 %v699_v22, 6.0  ;;  %v826_v23 = vmul.f32 %v2244_v37, %v2326_v36  ;;  %v656_v13 = vmul.f32 %v2268_v15, %v2220_v8  ;;  %v892_v1 = vmul.f32 %v2339_v58, %v2326_v36 }
  0xec   : > { %v2352_v57 = vmul.f32 %v2126_v29, %v706_v52  ;;  %v2356_v17 = vmul.f32 %v2332_v14, %v2334_v54  ;;  %v828_v4 = vmul.f32 %v2195_v51, %v2334_v54  ;;  %v912_v5 = vmul.f32 %v2254_v49, %v891_v46 }
  0xed   : > { %v2361_v59 = vmul.f32 %v2130_v30, %v708_v42  ;;  %846 = vrot.lane.b32.xlu1 %v826_v23, %s1930_s26  ;;  %v824_v30 = vmul.f32 %v2244_v37, %v2323_v0  ;;  %v665_v61 = vadd.f32 %v656_v13, %v623_v43  ;;  %v2391_v37 = vmul.f32 %v2234_v20, %v2318_v47 }
  0xee   : > { %v2366_v44 = vpop.permute.xlu1 %1143  ;;  %850 = vrot.lane.b32.xlu0 %v828_v4, %s1930_s26  ;;  %v827_v12 = vmul.f32 %v2195_v51, %v2352_v57  ;;  %v894_v8 = vmul.f32 %v2373_v27, %v2334_v54  ;;  %v2399_v15 = vmul.f32 %v2234_v20, %v2326_v36  ;;  %v2403_v28 = vmul.f32 %v2234_v20, %v2323_v0 }
  0xef   : > { %v829_v29 = vmul.f32 %v2195_v51, %v2361_v59  ;;  %v692_v51 = vadd.f32 %v2236_v24, %v665_v61  ;;  %v913_v31 = vmul.f32 %v2254_v49, %v892_v1  ;;  %v895_v9 = vmul.f32 %v2339_v58, %v2361_v59 }
  0xf0   : > { %v2414_v48 = vmul.f32 %v2332_v14, %v2318_v47  ;;  %v2418_v20 = vmul.f32 %v2313_v55, %v2326_v36  ;;  %v2422_v24 = vmul.f32 %v2313_v55, %v2361_v59  ;;  %v2426_v7 = vmul.f32 %v2316_v40, %v2352_v57 }
  0xf1   : > { %852 = vrot.lane.b32.xlu1 %v829_v29, %s1930_s26  ;;  %v2430_v11 = vmul.f32 %v2256_v53, %v2318_v47  ;;  %v915_v45 = vmul.f32 %v2258_v62, %v894_v8  ;;  %v890_v19 = vmul.f32 %v2349_v2, %v2323_v0  ;;  %v2438_v39 = vmul.f32 %v2256_v53, %v2326_v36 }
  0xf2   : > { %842 = vrot.lane.b32.xlu0 %v824_v30, %s1930_s26  ;;  %v2442_v22 = vmul.f32 %v2256_v53, %v2323_v0  ;;  %v701_v60 = vmax.f32 %v692_v51, 0.0  ;;  %v916_v50 = vmul.f32 %v2258_v62, %v895_v9  ;;  %v893_v52 = vmul.f32 %v2349_v2, %v2352_v57 }
  0xf3   : > { %v2385_v21 = vpop.permute.xlu1 %1224  ;;  %v2449_v42 = vunpack.i.h.bf16 %v2320_v18  ;;  %v1805_v23 = vunpack.i.l.bf16 %v2320_v18  ;;  %v911_v53 = vmul.f32 %v2254_v49, %v890_v19  ;;  %v830_v18 = vmul.f32 %v2200_v56, %v2247_v38 }
  0xf4   : > { %v2456_v16 = vmin.f32 %v701_v60, 6.0  ;;  %v914_v29 = vmul.f32 %v2258_v62, %v893_v52  ;;  %v832_v62 = vmul.f32 %v2200_v56, %v2250_v41 }
  0xf5   : > { %848 = vrot.lane.b32.xlu1 %v827_v12, %s1930_s26  ;;  %v973_v43 = vsel %vm972_vm9, %v1805_v23, %v2449_v42  ;;  %v979_v1 = vmul.f32 %v2449_v42, %v2326_v36  ;;  %v982_v51 = vmul.f32 %v2449_v42, %v2361_v59  ;;  %v980_v19 = vmul.f32 %v1805_v23, %v2352_v57 }
  0xf6   : > { %931 = vrot.lane.b32.xlu0 %v912_v5, %s1931_s25  ;;  %v831_v49 = vmul.f32 %v2200_v56, %v2456_v16  ;;  %v978_v46 = vmul.f32 %v973_v43, %v2318_v47  ;;  %v981_v61 = vmul.f32 %v973_v43, %v2334_v54 }
  0xf7   : > { %v2410_v33 = vpop.permute.xlu1 %1228  ;;  %v1000_v8 = vmul.f32 %v2263_v6, %v979_v1 }
  0xf8   : > { %v999_v12 = vmul.f32 %v2263_v6, %v978_v46  ;;  %v1002_v56 = vmul.f32 %v2205_v63, %v981_v61  ;;  %v788_v46 = vmul.f32 %v2159_v35, %v2334_v54  ;;  %v983_v61 = vmul.f32 %v1805_v23, %v2247_v38 }
  0xf9   : > { %933 = vrot.lane.b32.xlu1 %v913_v31, %s1931_s25  ;;  %v977_v31 = vmul.f32 %v1805_v23, %v2323_v0  ;;  %v1152_v23 = vmul.f32 %v2336_v3, %v2418_v20 }
  0xfa   : > { %937 = vrot.lane.b32.xlu0 %v915_v45, %s1931_s25  ;;  %v1003_v45 = vmul.f32 %v2205_v63, %v982_v51  ;;  %v985_v51 = vmul.f32 %v2449_v42, %v2250_v41  ;;  %v1154_v42 = vmul.f32 %v2366_v44, %v2356_v17  ;;  %v1153_v17 = vmul.f32 %v2366_v44, %v2426_v7 }
  0xfb   : > { %v998_v60 = vmul.f32 %v2263_v6, %v977_v31  ;;  %v1150_v31 = vmul.f32 %v2336_v3, %v2343_v25 }
  0xfc   : > { %v2452_v4 = vpop.permute.xlu1 %1147 }
  0xfd   : > { %939 = vrot.lane.b32.xlu1 %v916_v50, %s1931_s25  ;;  %v896_v50 = vmul.f32 %v2349_v2, %v2247_v38 }
  0xfe   : > { %929 = vrot.lane.b32.xlu0 %v911_v53, %s1931_s25  ;;  %v1001_v53 = vmul.f32 %v2205_v63, %v980_v19 }
 0x101   : > { %935 = vrot.lane.b32.xlu1 %v914_v29, %s1931_s25  ;;  %v2462_v30 = vpop.permute.xlu1 %1295  ;;  %v897_v29 = vmul.f32 %v2373_v27, %v2456_v16  ;;  %v787_v27 = vmul.f32 %v2156_v34, %v2352_v57 }
 0x102   : > { %854 = vrot.lane.b32.xlu0 %v830_v18, %s1930_s26  ;;  %v917_v18 = vmul.f32 %v2290_v32, %v896_v50 }
 0x103   : > { %v918_v2 = vmul.f32 %v2290_v32, %v897_v29 }
 0x105   : > { %856 = vrot.lane.b32.xlu1 %v831_v49, %s1930_s26  ;;  %v2471_v13 = vpop.permute.xlu1 %1818  ;;  %v898_v49 = vmul.f32 %v2339_v58, %v2250_v41 }
 0x106   : > { %858 = vrot.lane.b32.xlu0 %v832_v62, %s1930_s26  ;;  %s1937_s26 = smov 94  }
 0x107   : > { %v919_v63 = vmul.f32 %v2290_v32, %v898_v49  ;;  %v1069_v32 = vmul.f32 %v2307_v26, %v2334_v54 }
 0x109   : > { %1018 = vrot.lane.b32.xlu1 %v999_v12, %s1932_s27  ;;  %v2481_v5 = vpop.permute.xlu1 %1376  ;;  %v1070_v12 = vmul.f32 %v2307_v26, %v2361_v59 }
 0x10a   : > { %1020 = vrot.lane.b32.xlu0 %v1000_v8, %s1932_s27  ;;  %v1004_v8 = vmul.f32 %v2222_v10, %v983_v61  ;;  %v1137_v61 = vmul.f32 %v2313_v55, %v2250_v41  ;;  %v794_v55 = vpop.permute.xlu0 %793 }
 0x10d   : > { %1024 = vrot.lane.b32.xlu1 %v1002_v56, %s1932_s27  ;;  %v2490_v9 = vpop.permute.xlu1 %1380 }
 0x10e   : > { %1026 = vrot.lane.b32.xlu0 %v1003_v45, %s1932_s27 }
 0x111   : > { %1016 = vrot.lane.b32.xlu1 %v998_v60, %s1932_s27  ;;  %v2499_v52 = vpop.permute.xlu1 %1827 }
 0x112   : > { %1022 = vrot.lane.b32.xlu0 %v1001_v53, %s1932_s27 }
 0x115   : > { %941 = vrot.lane.b32.xlu1 %v917_v18, %s1931_s25  ;;  %v2509_v6 = vpop.permute.xlu1 %1384  ;;  %v1442_v18 = vld [vmem:[%s2868_s6] sm:$0xff] }
 0x116   : > { %943 = vrot.lane.b32.xlu0 %v918_v2, %s1931_s25  ;;  %v1443_v2 = vld [vmem:[%s2868_s6 + $0x8] sm:$0xff] }
 0x119   : > { %945 = vrot.lane.b32.xlu1 %v919_v63, %s1931_s25 }
 0x11a   : > { %v799_v62 = vpop.permute.xlu1 %798  ;;  %1085 = vrot.lane.b32.xlu0 %v2391_v37, %s1933_s28  ;;  %v1068_v37 = vmul.f32 %v2307_v26, %v2352_v57  ;;  %v1151_v26 = vmul.f32 %v2336_v3, %v2414_v48  ;;  %v1820_v48 = vunpack.i.l.bf16 %v2471_v13 }
 0x11b   : > { %v2519_v58 = vmul.f32 %v799_v62, %v787_v27  ;;  %v2521_v1 = vmul.f32 %v799_v62, %v788_v46  ;;  %v1135_v46 = vmul.f32 %v2316_v40, %v2247_v38  ;;  %v1158_v40 = vmul.f32 %v2452_v4, %v1137_v61 }
 0x11c   : > { %v1214_v49 = vmul.f32 %v1820_v48, %v2323_v0  ;;  %v1217_v63 = vmul.f32 %v1820_v48, %v2352_v57 }
 0x11d   : > { %1087 = vrot.lane.b32.xlu1 %v2399_v15, %s1933_s28  ;;  %v984_v15 = vmul.f32 %v973_v43, %v2456_v16  ;;  %v2560_v43 = vunpack.i.h.bf16 %v2471_v13 }
 0x11e   : > { %1091 = vrot.lane.b32.xlu0 %v1069_v32, %s1933_s28  ;;  %v1235_v27 = vmul.f32 %v2385_v21, %v1214_v49  ;;  %v1238_v62 = vmul.f32 %v2410_v33, %v1217_v63  ;;  %v1136_v32 = vmul.f32 %v2332_v14, %v2456_v16  ;;  %v1306_v14 = vmul.f32 %v2462_v30, %v2334_v54 }
 0x11f   : > { %v1005_v56 = vmul.f32 %v2222_v10, %v984_v15  ;;  %v1210_v20 = vsel %vm1209_vm10, %v1820_v48, %v2560_v43  ;;  %v1219_v50 = vmul.f32 %v2560_v43, %v2361_v59  ;;  %v2635_v15 = vpop.permute.xlu1 %803 }
 0x120   : > { %v1215_v3 = vmul.f32 %v1210_v20, %v2318_v47  ;;  %v1218_v19 = vmul.f32 %v1210_v20, %v2334_v54 }
 0x121   : > { %1093 = vrot.lane.b32.xlu1 %v1070_v12, %s1933_s28  ;;  %v1240_v29 = vmul.f32 %v2410_v33, %v1219_v50  ;;  %v1156_v12 = vmul.f32 %v2452_v4, %v1135_v46 }
 0x122   : > { %1083 = vrot.lane.b32.xlu0 %v2403_v28, %s1933_s28  ;;  %v1006_v28 = vmul.f32 %v2222_v10, %v985_v51  ;;  %v1155_v10 = vmul.f32 %v2366_v44, %v2422_v24  ;;  %v2880_v24 = vld [vmem:[#allocation5_spill] sm:$0xff]  ;;  %v1216_v44 = vmul.f32 %v2560_v43, %v2326_v36  ;;  %v1236_v7 = vmul.f32 %v2385_v21, %v1215_v3 }
 0x123   : > { %v1071_v45 = vmul.f32 %v2880_v24, %v2247_v38  ;;  %v1072_v13 = vmul.f32 %v2880_v24, %v2456_v16  ;;  %v1073_v25 = vmul.f32 %v2880_v24, %v2250_v41  ;;  %v1239_v53 = vmul.f32 %v2410_v33, %v1218_v19 }
 0x124   : > { %v1237_v60 = vmul.f32 %v2385_v21, %v1216_v44  ;;  %v1307_v21 = vmul.f32 %v2462_v30, %v2361_v59  ;;  %v2628_v33 = vunpack.i.h.bf16 %v2499_v52 }
 0x125   : > { %1089 = vrot.lane.b32.xlu1 %v1068_v37, %s1933_s28  ;;  %v1157_v37 = vmul.f32 %v2452_v4, %v1136_v32  ;;  %v2631_v4 = vunpack.i.l.bf16 %v2499_v52  ;;  %v1221_v52 = vmul.f32 %v1210_v20, %v2456_v16 }
 0x126   : > { %1028 = vrot.lane.b32.xlu0 %v1004_v8, %s1932_s27  ;;  %v1305_v8 = vmul.f32 %v2462_v30, %v2352_v57  ;;  %v1222_v30 = vmul.f32 %v2560_v43, %v2250_v41  ;;  %v1368_v43 = vmul.f32 %v2628_v33, %v2326_v36 }
 0x127   : > { %v1366_v63 = vmul.f32 %v2631_v4, %v2323_v0 }
 0x128   : > { %v1389_v36 = vmul.f32 %v2481_v5, %v1368_v43 }
 0x129   : > { %1030 = vrot.lane.b32.xlu1 %v1005_v56, %s1932_s27  ;;  %v2646_v56 = vsel %vm1361_vm11, %v2631_v4, %v2628_v33 }
 0x12a   : > { %1032 = vrot.lane.b32.xlu0 %v1006_v28, %s1932_s27  ;;  %v1367_v20 = vmul.f32 %v2646_v56, %v2318_v47 }
 0x12d   : > { %1170 = vrot.lane.b32.xlu1 %v1151_v26, %s1934_s29 }
 0x12e   : > { %1172 = vrot.lane.b32.xlu0 %v1152_v23, %s1934_s29  ;;  %v2881_v23 = vld [vmem:[#allocation6_spill] sm:$0xff] }
 0x131   : > { %1176 = vrot.lane.b32.xlu1 %v1154_v42, %s1934_s29 }
 0x132   : > { %1178 = vrot.lane.b32.xlu0 %v1155_v10, %s1934_s29 }
 0x135   : > { %1168 = vrot.lane.b32.xlu1 %v1150_v31, %s1934_s29 }
 0x136   : > { %1174 = vrot.lane.b32.xlu0 %v1153_v17, %s1934_s29  ;;  %v1242_v17 = vmul.f32 %v2881_v23, %v1221_v52 }
 0x139   : > { %1095 = vrot.lane.b32.xlu1 %v1071_v45, %s1933_s28  ;;  %v1243_v45 = vmul.f32 %v2881_v23, %v1222_v30 }
 0x13a   : > { %1097 = vrot.lane.b32.xlu0 %v1072_v13, %s1933_s28 }
 0x13d   : > { %1099 = vrot.lane.b32.xlu1 %v1073_v25, %s1933_s28  ;;  %s2815_s28 = scalar_lea.hbm %s2871_s9, %s1704_s23 }
 0x13e   : > { %1255 = vrot.lane.b32.xlu0 %v1236_v7, %s1935_s15  ;;  %v1388_v7 = vmul.f32 %v2481_v5, %v1367_v20 }
 0x141   : > { %1257 = vrot.lane.b32.xlu1 %v1237_v60, %s1935_s15 }
 0x142   : > { %1261 = vrot.lane.b32.xlu0 %v1239_v53, %s1935_s15 }
 0x145   : > { %1263 = vrot.lane.b32.xlu1 %v1240_v29, %s1935_s15 }
 0x146   : > { %1447 = vperm.xlu0 %1825, %v1442_v18  }
 0x149   : > { %1452 = vperm.xlu1 %1831, %v1443_v2  }
 0x14a   : > { %1253 = vrot.lane.b32.xlu0 %v1235_v27, %s1935_s15 }
 0x14d   : > { %1259 = vrot.lane.b32.xlu1 %v1238_v62, %s1935_s15  ;;  %v1369_v62 = vmul.f32 %v2631_v4, %v2352_v57 }
 0x14e   : > { %1180 = vrot.lane.b32.xlu0 %v1156_v12, %s1934_s29  ;;  %v1387_v12 = vmul.f32 %v2481_v5, %v1366_v63 }
 0x151   : > { %1182 = vrot.lane.b32.xlu1 %v1157_v37, %s1934_s29 }
 0x152   : > { %1184 = vrot.lane.b32.xlu0 %v1158_v40, %s1934_s29  ;;  %v1390_v40 = vmul.f32 %v2490_v9, %v1369_v62  ;;  %s1548_s29 = scalar_lea.sflag [#allocation3], %s430_s18 }
 0x155   : > { %1322 = vrot.lane.b32.xlu1 %v2430_v11, %s1936_s24  ;;  %v786_v11 = vmul.f32 %v2159_v35, %v2318_v47  ;;  %v1370_v47 = vmul.f32 %v2646_v56, %v2334_v54 }
 0x156   : > { %1324 = vrot.lane.b32.xlu0 %v2438_v39, %s1936_s24  ;;  %v1220_v39 = vmul.f32 %v1820_v48, %v2247_v38 }
 0x157   : > { %v807_v28 = vmul.f32 %v794_v55, %v786_v11  ;;  %v1391_v54 = vmul.f32 %v2490_v9, %v1370_v47 }
 0x158   : > { %v1241_v42 = vmul.f32 %v2881_v23, %v1220_v39  ;;  %v790_v23 = vmul.f32 %v2159_v35, %v2456_v16 }
 0x159   : > { %1328 = vrot.lane.b32.xlu1 %v1306_v14, %s1936_s24 }
 0x15a   : > { %1330 = vrot.lane.b32.xlu0 %v1307_v21, %s1936_s24 }
 0x15c   : > { %v845_v51 = vpop.permute.xlu0 %844 }
 0x15d   : > { %1320 = vrot.lane.b32.xlu1 %v2442_v22, %s1936_s24  ;;  %v785_v22 = vmul.f32 %v2156_v34, %v2323_v0 }
 0x15e   : > { %1326 = vrot.lane.b32.xlu0 %v1305_v8, %s1936_s24  ;;  %v1372_v8 = vmul.f32 %v2631_v4, %v2247_v38 }
 0x15f   : > { %v847_v26 = vpop.permute.xlu1 %846  ;;  %v806_v3 = vmul.f32 %v794_v55, %v785_v22  ;;  %v2882_v55 = vld [vmem:[#allocation7_spill] sm:$0xff] }
 0x160   : > { %v862_v10 = vsel %vm860_vm12, %v845_v51, %v847_v26  ;;  %v851_v31 = vpop.permute.xlu0 %850  ;;  %v1308_v21 = vmul.f32 %v2882_v55, %v2247_v38  ;;  %v1309_v5 = vmul.f32 %v2882_v55, %v2456_v16  ;;  %v1373_v26 = vmul.f32 %v2646_v56, %v2456_v16 }
 0x161   : > { %v874_v48 = vadd.f32 %v862_v10, %v807_v28  ;;  %1265 = vrot.lane.b32.xlu1 %v1241_v42, %s1935_s15  ;;  %v1310_v28 = vmul.f32 %v2882_v55, %v2250_v41  ;;  %v1393_v4 = vmul.f32 %v2509_v6, %v1372_v8  ;;  %v811_v10 = vmul.f32 %v2635_v15, %v790_v23 }
 0x162   : > { %1267 = vrot.lane.b32.xlu0 %v1242_v17, %s1935_s15  ;;  %v1394_v16 = vmul.f32 %v2509_v6, %v1373_v26 }
 0x163   : > { %v853_v24 = vpop.permute.xlu1 %852 }
 0x164   : > { %v864_v13 = vsel %vm860_vm12, %v851_v31, %v853_v24  ;;  %v843_v44 = vpop.permute.xlu0 %842 }
 0x165   : > { %v876_v25 = vadd.f32 %v864_v13, %v2521_v1  ;;  %1269 = vrot.lane.b32.xlu1 %v1243_v45, %s1935_s15  ;;  %v861_v19 = vsel %vm860_vm12, %v843_v44, %v845_v51  ;;  %v1371_v1 = vmul.f32 %v2628_v33, %v2361_v59 }
 0x166   : > { %v873_v60 = vadd.f32 %v861_v19, %v806_v3  ;;  %1407 = vrot.lane.b32.xlu0 %v1388_v7, %s1937_s26 }
 0x167   : > { %v849_v50 = vpop.permute.xlu1 %848  ;;  %v1392_v2 = vmul.f32 %v2490_v9, %v1371_v1  ;;  %v789_v9 = vmul.f32 %v2156_v34, %v2247_v38  ;;  %v1374_v38 = vmul.f32 %v2628_v33, %v2250_v41 }
 0x168   : > { %v863_v53 = vsel %vm860_vm12, %v849_v50, %v851_v31  ;;  %v932_v18 = vpop.permute.xlu0 %931 }
 0x169   : > { %v875_v29 = vadd.f32 %v863_v53, %v2519_v58  ;;  %1409 = vrot.lane.b32.xlu1 %v1389_v36, %s1937_s26  ;;  %v1444_v58 = vld [vmem:[%s2868_s6 + $0x10] sm:$0xff]  ;;  %v810_v42 = vmul.f32 %v2635_v15, %v789_v9  ;;  %v1395_v17 = vmul.f32 %v2509_v6, %v1374_v38  ;;  %v1484_v15 = vld [vmem:[%s2870_s8] sm:$0xf] }
 0x16a   : > { %1413 = vrot.lane.b32.xlu0 %v1391_v54, %s1937_s26 }
 0x16b   : > { %v934_v49 = vpop.permute.xlu1 %933 }
 0x16c   : > { %v949_v59 = vsel %vm947_vm13, %v932_v18, %v934_v49  ;;  %v938_v46 = vpop.permute.xlu0 %937 }
 0x16d   : > { %v961_v27 = vadd.f32 %v949_v59, %v874_v48  ;;  %1415 = vrot.lane.b32.xlu1 %v1392_v2, %s1937_s26 }
 0x16e   : > { %1457 = vperm.xlu0 %1825, %v1444_v58  }
 0x16f   : > { %v940_v32 = vpop.permute.xlu1 %939 }
 0x170   : > { %v951_v61 = vsel %vm947_vm13, %v938_v46, %v940_v32  ;;  %v930_v37 = vpop.permute.xlu0 %929 }
 0x171   : > { %v963_v0 = vadd.f32 %v951_v61, %v876_v25  ;;  %1405 = vrot.lane.b32.xlu1 %v1387_v12, %s1937_s26  ;;  %v948_v14 = vsel %vm947_vm13, %v930_v37, %v932_v18 }
 0x172   : > { %v960_v11 = vadd.f32 %v948_v14, %v873_v60  ;;  %1411 = vrot.lane.b32.xlu0 %v1390_v40, %s1937_s26 }
 0x173   : > { %v936_v39 = vpop.permute.xlu1 %935 }
 0x174   : > { %v950_v57 = vsel %vm947_vm13, %v936_v39, %v938_v46  ;;  %v855_v52 = vpop.permute.xlu0 %854 }
 0x175   : > { %v962_v51 = vadd.f32 %v950_v57, %v875_v29  ;;  %1332 = vrot.lane.b32.xlu1 %v1308_v21, %s1936_s24 }
 0x176   : > { %1334 = vrot.lane.b32.xlu0 %v1309_v5, %s1936_s24 }
 0x177   : > { %v857_v30 = vpop.permute.xlu1 %856 }
 0x178   : > { %v865_v34 = vsel %vm860_vm12, %v855_v52, %v857_v30  ;;  %v859_v48 = vpop.permute.xlu0 %858 }
 0x179   : > { %v877_v22 = vadd.f32 %v865_v34, %v810_v42  ;;  %1336 = vrot.lane.b32.xlu1 %v1310_v28, %s1936_s24  ;;  %v866_v35 = vsel %vm860_vm12, %v857_v30, %v859_v48  ;;  %s432_s24 = scalar_lea.vmem [#allocation2], %s1681_s20  ;;  %s1840_s20 = scalar_lea.vmem %s1839_s16, 256 }
 0x17a   : > { %v878_v56 = vadd.f32 %v866_v35, %v811_v10  ;;  %1417 = vrot.lane.b32.xlu0 %v1393_v4, %s1937_s26 }
 0x17b   : > { %v1019_v31 = vpop.permute.xlu1 %1018 }
 0x17c   : > { %v1021_v41 = vpop.permute.xlu0 %1020 }
 0x17d   : > { %1419 = vrot.lane.b32.xlu1 %v1394_v16, %s1937_s26  ;;  %v1036_v33 = vsel %vm1034_vm14, %v1019_v31, %v1021_v41 }
 0x17e   : > { %v1048_v20 = vadd.f32 %v1036_v33, %v961_v27  ;;  %1421 = vrot.lane.b32.xlu0 %v1395_v17, %s1937_s26  ;;  %s1564_s26 = sshll.u32 %s432_s24, 4  ;;  %s2817_s26 = int_to_ptr.vmem [resolvable:$true] %s1564_s26 }
 0x17f   : > { %v1025_v24 = vpop.permute.xlu1 %1024  ;;  %s1834_s15 = scalar_lea.vmem %s2817_s26, 128  ;;  %p1841_p1 = scmp.lt.s32.totalorder %s2817_s26, %s1839_s16 }
 0x180   : > { %v1027_v45 = vpop.permute.xlu0 %1026  ;;  %p1835_p12 = scmp.ne.s32.totalorder %s2817_s26, %s1834_s15  ;;  %p1842_p2 = scmp.lt.s32.totalorder %s1840_s20, %s1834_s15 }
 0x181   : > { %1487 = vperm.xlu1 %1831, %v1484_v15   ;;  %v1038_v43 = vsel %vm1034_vm14, %v1025_v24, %v1027_v45 }
 0x182   : > { %v1050_v13 = vadd.f32 %v1038_v43, %v963_v0  ;;  %p1836_p13 = pnand %p1835_p12, %p2029_p4  ;;  %p1843_p3 = por %p1842_p2, %p1841_p1 }
 0x183   : > { %v1017_v3 = vpop.permute.xlu1 %1016 }
 0x184   : > { %v1035_v6 = vsel %vm1034_vm14, %v1017_v3, %v1019_v31  ;;  %v1023_v44 = vpop.permute.xlu0 %1022  ;;  %p1837_p0 = pneg %p1836_p13 }
 0x185   : > { %v1047_v25 = vadd.f32 %v1035_v6, %v960_v11  ;;  %v1037_v7 = vsel %vm1034_vm14, %v1023_v44, %v1025_v24 }
 0x186   : > { %v1049_v47 = vadd.f32 %v1037_v7, %v962_v51  ;;  %p1844_p5 = pnand %p1843_p3, %p1837_p0 }
 0x187   : > { %v942_v19 = vpop.permute.xlu1 %941 }
 0x188   : > { %v944_v60 = vpop.permute.xlu0 %943 }
 0x189   : > { %v952_v50 = vsel %vm947_vm13, %v942_v19, %v944_v60 }
 0x18a   : > { %v964_v36 = vadd.f32 %v952_v50, %v877_v22 }
 0x18b   : > { %v946_v1 = vpop.permute.xlu1 %945 }
 0x18c   : > { %v953_v53 = vsel %vm947_vm13, %v944_v60, %v946_v1  ;;  %v1086_v18 = vpop.permute.xlu0 %1085 }
 0x18d   : > { %v965_v29 = vadd.f32 %v953_v53, %v878_v56 }
 0x18f   : > { %v1088_v54 = vpop.permute.xlu1 %1087 }
 0x190   : > { %v1103_v49 = vsel %vm1101_vm15, %v1086_v18, %v1088_v54  ;;  %v1092_v63 = vpop.permute.xlu0 %1091 }
 0x191   : > { %v1115_v2 = vadd.f32 %v1103_v49, %v1048_v20 }
 0x193   : > { %v1094_v59 = vpop.permute.xlu1 %1093 }
 0x194   : > { %v1105_v58 = vsel %vm1101_vm15, %v1092_v63, %v1094_v59  ;;  %v1084_v46 = vpop.permute.xlu0 %1083 }
 0x195   : > { %v1117_v27 = vadd.f32 %v1105_v58, %v1050_v13  ;;  %v1102_v62 = vsel %vm1101_vm15, %v1084_v46, %v1086_v18 }
 0x196   : > { %v1114_v32 = vadd.f32 %v1102_v62, %v1047_v25 }
 0x197   : > { %v1090_v12 = vpop.permute.xlu1 %1089 }
 0x198   : > { %v1104_v61 = vsel %vm1101_vm15, %v1090_v12, %v1092_v63  ;;  %v1029_v37 = vpop.permute.xlu0 %1028 }
 0x199   : > { %v2738_v0 = vadd.f32 %v1104_v61, %v1049_v47 }
 0x19b   : > { %v1031_v40 = vpop.permute.xlu1 %1030 }
 0x19c   : > { %v1039_v14 = vsel %vm1034_vm14, %v1029_v37, %v1031_v40  ;;  %v1033_v21 = vpop.permute.xlu0 %1032 }
 0x19d   : > { %v2741_v55 = vadd.f32 %v1039_v14, %v964_v36  ;;  %v1040_v11 = vsel %vm1034_vm14, %v1031_v40, %v1033_v21 }
 0x19e   : > { %v2744_v39 = vadd.f32 %v1040_v11, %v965_v29 }
 0x19f   : > { %v1171_v57 = vpop.permute.xlu1 %1170 }
 0x1a0   : > { %v1173_v8 = vpop.permute.xlu0 %1172 }
 0x1a1   : > { %v1188_v13 = vsel %vm1186_vm0, %v1171_v57, %v1173_v8 }
 0x1a2   : > { %v1200_v25 = vadd.f32 %v1188_v13, %v1115_v2 }
 0x1a3   : > { %v1177_v5 = vpop.permute.xlu1 %1176 }
 0x1a4   : > { %v1179_v28 = vpop.permute.xlu0 %1178 }
 0x1a5   : > { %v1190_v7 = vsel %vm1186_vm0, %v1177_v5, %v1179_v28 }
 0x1a6   : > { %v1202_v36 = vadd.f32 %v1190_v7, %v1117_v27 }
 0x1a7   : > { %v1169_v9 = vpop.permute.xlu1 %1168 }
 0x1a8   : > { %v1187_v51 = vsel %vm1186_vm0, %v1169_v9, %v1171_v57  ;;  %v1175_v26 = vpop.permute.xlu0 %1174 }
 0x1a9   : > { %v1199_v52 = vadd.f32 %v1187_v51, %v1114_v32  ;;  %v1189_v63 = vsel %vm1186_vm0, %v1175_v26, %v1177_v5 }
 0x1aa   : > { %v1201_v61 = vadd.f32 %v1189_v63, %v2738_v0 }
 0x1ab   : > { %v2747_v23 = vpop.permute.xlu1 %1095 }
 0x1ac   : > { %v2749_v42 = vpop.permute.xlu0 %1097 }
 0x1ad   : > { %v1106_v0 = vsel %vm1101_vm15, %v2747_v23, %v2749_v42 }
 0x1af   : > { %v2751_v30 = vpop.permute.xlu1 %1099 }
 0x1b0   : > { %v1256_v34 = vpop.permute.xlu0 %1255 }
 0x1b3   : > { %v1258_v38 = vpop.permute.xlu1 %1257 }
 0x1b4   : > { %v1262_v4 = vpop.permute.xlu0 %1261  ;;  %v1273_v6 = vsel %vm1271_vm1, %v1256_v34, %v1258_v38 }
 0x1b5   : > { %v1285_v19 = vadd.f32 %v1273_v6, %v1200_v25 }
 0x1b7   : > { %v1264_v10 = vpop.permute.xlu1 %1263 }
 0x1b8   : > { %v1275_v50 = vsel %vm1271_vm1, %v1262_v4, %v1264_v10 }
 0x1b9   : > { %v1287_v54 = vadd.f32 %v1275_v50, %v1202_v36 }
 0x1c5   : > { %v2753_v22 = vpop.permute.xlu0 %1447 }
 0x1c8   : > { %v2755_v48 = vpop.permute.xlu1 %1452 }
 0x1c9   : > { %v1254_v35 = vpop.permute.xlu0 %1253 }
 0x1ca   : > { %v1272_v59 = vsel %vm1271_vm1, %v1254_v35, %v1256_v34 }
 0x1cb   : > { %v1284_v37 = vadd.f32 %v1272_v59, %v1199_v52 }
 0x1cc   : > { %v1260_v16 = vpop.permute.xlu1 %1259 }
 0x1cd   : > { %v2757_v56 = vpop.permute.xlu0 %1180  ;;  %v1274_v32 = vsel %vm1271_vm1, %v1260_v16, %v1262_v4 }
 0x1ce   : > { %v1286_v11 = vadd.f32 %v1274_v32, %v1201_v61 }
 0x1d0   : > { %v2759_v31 = vpop.permute.xlu1 %1182 }
 0x1d1   : > { %v2761_v17 = vpop.permute.xlu0 %1184 }
 0x1d2   : > { %v1192_v6 = vsel %vm1186_vm0, %v2759_v31, %v2761_v17 }
 0x1d4   : > { %v1323_v41 = vpop.permute.xlu1 %1322 }
 0x1d5   : > { %v1325_v33 = vpop.permute.xlu0 %1324 }
 0x1d6   : > { %v1340_v47 = vsel %vm1338_vm2, %v1323_v41, %v1325_v33  ;;  %v1107_v33 = vsel %vm1101_vm15, %v2749_v42, %v2751_v30 }
 0x1d7   : > { %v1352_v1 = vadd.f32 %v1340_v47, %v1285_v19  ;;  %v1119_v42 = vadd.f32 %v1107_v33, %v2744_v39 }
 0x1d8   : > { %v1329_v15 = vpop.permute.xlu1 %1328 }
 0x1d9   : > { %v1331_v20 = vpop.permute.xlu0 %1330 }
 0x1da   : > { %v1342_v29 = vsel %vm1338_vm2, %v1329_v15, %v1331_v20  ;;  %v1118_v20 = vadd.f32 %v1106_v0, %v2741_v55 }
 0x1db   : > { %v1354_v58 = vadd.f32 %v1342_v29, %v1287_v54 }
 0x1dc   : > { %v1321_v24 = vpop.permute.xlu1 %1320 }
 0x1dd   : > { %v1327_v45 = vpop.permute.xlu0 %1326  ;;  %v1339_v27 = vsel %vm1338_vm2, %v1321_v24, %v1323_v41 }
 0x1de   : > { %v1341_v21 = vsel %vm1338_vm2, %v1327_v45, %v1329_v15  ;;  %v1351_v57 = vadd.f32 %v1339_v27, %v1284_v37  ;;  %v1191_v15 = vsel %vm1186_vm0, %v2757_v56, %v2759_v31 }
 0x1df   : > { %v1353_v28 = vadd.f32 %v1341_v21, %v1286_v11  ;;  %v1203_v30 = vadd.f32 %v1191_v15, %v1118_v20 }
 0x1e0   : > { %v1266_v43 = vpop.permute.xlu1 %1265 }
 0x1e1   : > { %v2764_v3 = vpop.permute.xlu0 %1267 }
 0x1e4   : > { %v1270_v44 = vpop.permute.xlu1 %1269 }
 0x1e5   : > { %v1408_v60 = vpop.permute.xlu0 %1407  ;;  %v1277_v55 = vsel %vm1271_vm1, %v2764_v3, %v1270_v44 }
 0x1e8   : > { %v1410_v53 = vpop.permute.xlu1 %1409 }
 0x1e9   : > { %v1425_v18 = vsel %vm1423_vm3, %v1408_v60, %v1410_v53  ;;  %v1414_v2 = vpop.permute.xlu0 %1413 }
 0x1ea   : > { %v1437_v49 = vadd.f32 %v1425_v18, %v1352_v1 }
 0x1ec   : > { %v1416_v46 = vpop.permute.xlu1 %1415  ;;  %v1461_v62 = vadd.f32 %v2753_v22, %v1437_v49 }
 0x1ed   : > { %v1427_v12 = vsel %vm1423_vm3, %v1414_v2, %v1416_v46  ;;  %v1458_v14 = vpop.permute.xlu0 %1457 }
 0x1ee   : > { %v1439_v40 = vadd.f32 %v1427_v12, %v1354_v58  ;;  %v1467_v9 = vmax.f32 %v1461_v62, 0.0  ;;  %v1478_v62 = vld [vmem:[%s2869_s7] sm:$0xf] }
 0x1ef   : > { %v1479_v12 = vpack.c.bf16 %v1478_v62, %v1478_v62 }
 0x1f0   : > { %v1406_v5 = vpop.permute.xlu1 %1405  ;;  %v1463_v8 = vadd.f32 %v2755_v48, %v1439_v40  ;;  %v1473_v35 = vmin.f32 %v1467_v9, 6.0 }
 0x1f1   : > { %v1424_v51 = vsel %vm1423_vm3, %v1406_v5, %v1408_v60  ;;  %v1412_v34 = vpop.permute.xlu0 %1411 }
 0x1f2   : > { %v1436_v26 = vadd.f32 %v1424_v51, %v1351_v57  ;;  %v1469_v38 = vmax.f32 %v1463_v8, 0.0  ;;  %v1426_v52 = vsel %vm1423_vm3, %v1412_v34, %v1414_v2 }
 0x1f3   : > { %v1438_v4 = vadd.f32 %v1426_v52, %v1353_v28 }
 0x1f4   : > { %v1333_v10 = vpop.permute.xlu1 %1332  ;;  %v1475_v16 = vmin.f32 %v1469_v38, 6.0  ;;  %v1460_v41 = vadd.f32 %v2753_v22, %v1436_v26  ;;  %v1276_v22 = vsel %vm1271_vm1, %v1266_v43, %v2764_v3 }
 0x1f5   : > { %v1335_v24 = vpop.permute.xlu0 %1334  ;;  %v1462_v45 = vadd.f32 %v2755_v48, %v1438_v4  ;;  %v1204_v48 = vadd.f32 %v1192_v6, %v1119_v42  ;;  %v1288_v47 = vadd.f32 %v1276_v22, %v1203_v30 }
 0x1f6   : > { %v1481_v23 = vpack.c.bf16 %v1475_v16, %v1473_v35  ;;  %v1466_v13 = vmax.f32 %v1460_v41, 0.0  ;;  %v1343_v7 = vsel %vm1338_vm2, %v1333_v10, %v1335_v24 }
 0x1f7   : > { %v1468_v56 = vmax.f32 %v1462_v45, 0.0  ;;  %v1289_v17 = vadd.f32 %v1277_v55, %v1204_v48  ;;  %v1355_v43 = vadd.f32 %v1343_v7, %v1288_v47 }
 0x1f8   : > { %1501 = vmatprep.subr.bf16.mxu0 %v1481_v23  ;;  %v1337_v25 = vpop.permute.xlu1 %1336  ;;  %v1472_v60 = vmin.f32 %v1466_v13, 6.0 }
 0x1f9   : > { %v1418_v19 = vpop.permute.xlu0 %1417  ;;  %v1474_v50 = vmin.f32 %v1468_v56, 6.0  ;;  %v1344_v31 = vsel %vm1338_vm2, %v1335_v24, %v1337_v25 }
 0x1fa   : > { %v1356_v53 = vadd.f32 %v1344_v31, %v1289_v17 }
 0x1fb   : > { %v1480_v39 = vpack.c.bf16 %v1474_v50, %v1472_v60 }
 0x1fc   : > { %v1420_v36 = vpop.permute.xlu1 %1419 }
 0x1fd   : > { %v1428_v1 = vsel %vm1423_vm3, %v1418_v19, %v1420_v36  ;;  %v1422_v18 = vpop.permute.xlu0 %1421  ;;  %1502 = vmatpush1.bf16.msra.mxu0 %v1480_v39 }
 0x1fe   : > { %v1440_v29 = vadd.f32 %v1428_v1, %v1355_v43  ;;  %v1429_v3 = vsel %vm1423_vm3, %v1420_v36, %v1422_v18 }
 0x1ff   : > { %v1441_v54 = vadd.f32 %v1429_v3, %v1356_v53 }
 0x200   : > { %v1464_v44 = vadd.f32 %v1458_v14, %v1440_v29  ;;  %v1488_v61 = vpop.permute.xlu1 %1487 }
 0x201   : > { %v1465_v49 = vadd.f32 %v1458_v14, %v1441_v54 }
 0x202   : > { %v1470_v2 = vmax.f32 %v1464_v44, 0.0 }
 0x203   : > { %v1471_v63 = vmax.f32 %v1465_v49, 0.0 }
 0x204   : > { %v1476_v59 = vmin.f32 %v1470_v2, 6.0 }
 0x205   : > { %v1477_v58 = vmin.f32 %v1471_v63, 6.0 }
 0x206   : > { %v1482_v46 = vpack.c.bf16 %v1476_v59, %v1476_v59 }
 0x207   : > { %v1483_v32 = vpack.c.bf16 %v1477_v58, %v1477_v58 }
 0x208   : > { %v1496_v27 = vsel %vm1494_vm4, %v1482_v46, 0 }
 0x209   : > { %1694 = vmatprep.subr.msk.bf16.mxu0 %vm1494_vm4, %v1483_v32 }
 0x20a   : > { %1504 = vmatpush1.bf16.msra.mxu0 %v1496_v27 }
 0x20d   : > { %1695 = vmatmul.mubr.msk.bf16.vlgmr.msra.gmra.mrb[0].mxu0 %vm1490_vm5, %v1479_v12 }
 0x2e0   : > { %v1535_v37 = vpop.f32.mrb[0].mxu0 }
 0x2e1   : > { %v1536_v40 = vadd.f32 %v1535_v37, %v1488_v61  ;;  %v1537_v14 = vpop.f32.mrb[1].mxu0 }
 0x2e2   : > { %v1538_v21 = vadd.f32 %v1537_v14, %v1488_v61  ;;  %v1539_v11 = vpop.f32.mrb[2].mxu0 }
 0x2e3   : > { %v1540_v57 = vpop.f32.mrb[3].mxu0 }
 0x2e4   : > { %v1544_v5 = vcombine.low %v1536_v40, %v1538_v21 }
 0x2e6   : > { %1546 = vst [vmem:[%s432_s24] sm:$0xff] %v1544_v5 }
 0x2e7   : > { %1847 = shalt.err (!%p1844_p5)
}
 0x2e8   : > { %s1848_s18 = scalar_lea.hbm %s2815_s28, 128  ;;  %s1852_s25 = scalar_lea.hbm %s2871_s9, 256 }
 0x2e9   : > { %p1849_p6 = scmp.ne.s32.totalorder %s2815_s28, %s1848_s18  ;;  %p1853_p10 = scmp.lt.u32.totalorder %s2815_s28, %s2871_s9 }
 0x2ea   : > { %p1854_p11 = scmp.lt.u32.totalorder %s1852_s25, %s1848_s18  ;;  %p1856_p13 = scmp.lt.u32.totalorder %s1848_s18, %s2815_s28 }
 0x2eb   : > { %p1850_p7 = pnand %p1849_p6, %p2029_p4 }
 0x2ec   : > { %p1855_p12 = por %p1854_p11, %p1853_p10 }
 0x2ed   : > { %p1851_p9 = pneg %p1850_p7 }
 0x2ee   : > { %p1857_p0 = por %p1856_p13, %p1855_p12 }
 0x2f0   : > { %p1858_p1 = pnand %p1857_p0, %p1851_p9 }
 0x2f2   : > { %1861 = shalt.err (!%p1858_p1)
}
 0x2f3   : > { %1705 = dma.vmem_to_hbm [thread:$0]  (%p2029_p4), %s2817_s26, 128, %s2815_s28, %s1548_s29  }
 0x2f4 PF: > { %p1711_p2 = scmp.ge.s32.totalorder %s1912_s14, 2  ;;  %s1576_s15 = sand.u32 1, %s1892_s30  }
 0x2f5   : > { %s1577_s16 = scalar_lea.sflag [#allocation3], %s1576_s15 }
 0x2f6   : > { %p1708_p3 = pnand %p1711_p2, %p2036_p8 }
 0x2f8   : > { %1887 = dma.done.wait (!%p1708_p3), %s1577_s16, 128  }
 0x2f9   : > { %1889 = vsyncadd (!%p1708_p3), %s1577_s16, 4294967168  ;;  %s22_s14 = sadd.s32 1, %s1912_s14   ;;  %s2883_s30 = smov %s1896_s10 }
 0x2fa   : > { %p19_p5 = scmp.ge.s32.totalorder %s22_s14, 4   ;;  %s2884_s10 = smov %s1900_s11 }
 0x2fb   : > { %s2885_s11 = smov %s2042_s22  ;;  %s2886_s12 = smov %s1908_s13 }
 0x2fc   : > { %s2887_s13 = smov %s2889_s17  ;;  %21 = sbr.rel (!%p19_p5) target bundleno = 4 (0x4), region = 97 }
 0x303   :  { %1582 = vsyncpa [#allocation3], 1 }
 0x304   :  { %1584 = vsyncpa [#allocation3 + $0x1], 1 }

</bundles_post_ra>
